<compile_context>
chip_gen: v5e
topology: v5e:2x2
jax: 0.10.0
libtpu: 0.0.40
codegen_flags: <defaults>
</compile_context>

<pallas_src>
import math
import jax
import jax.numpy as jnp
from jax import lax
from jax.experimental import pallas as pl
from jax.experimental.pallas import tpu as pltpu


def _tpu_vmem_capacity_bytes():
    try:
        return int(pltpu.get_tpu_info().vmem_capacity_bytes)
    except Exception:
        return 128 << 20


def _choose_batch_block(B, L, S, max_rows):
    """Largest divisor BB of B whose stacked blocks stay (8,128)-tileable and
    bounded in VMEM, preferring >= 2 grid steps (megacore + DMA pipelining)."""
    cands = []
    for bb in range(1, B + 1):
        if B % bb:
            continue
        if bb != B and ((bb * L) % 8 or (bb * S) % 8):
            continue
        if bb != 1 and bb * max(L, S) > max_rows:
            continue
        cands.append(bb)
    if not cands:
        return 1
    steps = lambda bb: B // bb
    pool = [bb for bb in cands if steps(bb) >= 2] or cands      # >= 2 grid steps
    pool4 = [bb for bb in pool if steps(bb) >= 4 and bb * L >= 128]
    if pool4:                                                   # >= 4 once MXU is filled
        pool = pool4
    even = [bb for bb in pool if steps(bb) % 2 == 0]
    if even:
        pool = even
    return max(pool)


def _choose_ffn_chunk(d_ff, max_chunk=1024):
    """Largest divisor of d_ff <= max_chunk, preferring lane (128) multiples."""
    if d_ff <= max_chunk:
        return d_ff
    divs = [c for c in range(1, max_chunk + 1) if d_ff % c == 0]
    lane = [c for c in divs if c % 128 == 0]
    return max(lane) if lane else max(divs)


def _vmem_limit_bytes(BB, L, S, D, D_FF, ff_chunk, cap):
    bf16, f32 = 2, 4
    weights = bf16 * (D * D + D * 2 * D + D * D + D * D_FF + D_FF * D)
    biases = f32 * (D + 2 * D + D + D_FF + D + 4 * D)
    io = 2 * (f32 * BB * L * D * 2 + bf16 * BB * S * D)          # double-buffered x/out/cross
    interm = f32 * (BB * L * (5 * D + 2 * ff_chunk) + BB * S * 2 * D)
    est = weights + biases + io + interm
    # never request the whole physical VMEM (leave headroom for Mosaic scratch)
    return int(min(max(2 * est, 32 << 20), int(0.75 * cap)))


def make_cross_layer_kernel(BB, L, S, D, D_FF, H, FF_CHUNK):
    E = D // H
    N_FF_CHUNKS = D_FF // FF_CHUNK
    scale = 1.0 / math.sqrt(E)
    EPS = 1e-5
    BF16 = jnp.bfloat16

    def kernel(x_ref, cr_ref,
               wq_ref, bq_ref, wkv_ref, bkv_ref, wo_ref, bo_ref,
               g1_ref, be1_ref,
               w1_ref, bf1_ref, w2_ref, bf2_ref,
               g2_ref, be2_ref,
               out_ref, ctx_ref):
        x = x_ref[...]                                     # (BB*L, D)  f32
        cr = cr_ref[...]                                   # (BB*S, D)  bf16 (cast in wrapper)

        # --- stacked Q / fused K|V projections: bf16 operands, f32 accumulation ---
        q = jnp.dot(x.astype(BF16), wq_ref[...],
                    preferred_element_type=jnp.float32) + bq_ref[...]      # (BB*L, D)
        kv = jnp.dot(cr, wkv_ref[...],
                     preferred_element_type=jnp.float32) + bkv_ref[...]    # (BB*S, 2D)
        q_b = q.astype(BF16)
        kv_b = kv.astype(BF16)

        # --- multi-head full attention (FullAttention, mask_flag=False) ---
        # Per-head context is written into a VMEM scratch; the output projection
        # runs once on the full slab afterwards (single K = D matmul).
        # NOTE: BB/H are small static trip counts here; for production-size H/BB
        # convert these to lax.fori_loop accumulating into ctx_ref to bound
        # vreg live ranges.
        for i in range(BB):
            qi = q_b[i * L:(i + 1) * L, :]                 # (L, D)  bf16
            kvi = kv_b[i * S:(i + 1) * S, :]               # (S, 2D) bf16
            heads = []
            for h in range(H):
                qh = qi[:, h * E:(h + 1) * E]              # (L, E)
                kh = kvi[:, h * E:(h + 1) * E]             # (S, E)
                vh = kvi[:, D + h * E:D + (h + 1) * E]     # (S, E)
                # contract on the last dim of both operands (no kh.T relayout)
                s = lax.dot_general(qh, kh, (((1,), (1,)), ((), ())),
                                    preferred_element_type=jnp.float32) * scale
                s = s - jnp.max(s, axis=-1, keepdims=True)
                p = jnp.exp(s)
                p = p * pl.reciprocal(jnp.sum(p, axis=-1, keepdims=True), approx=True)
                heads.append(jnp.dot(p.astype(BF16), vh,
                                     preferred_element_type=jnp.float32))  # (L, E) f32
            # one lane concat per sub-block; sublane-aligned scratch store (L % 8 == 0)
            ctx_ref[i * L:(i + 1) * L, :] = (heads[0] if H == 1
                                             else jnp.concatenate(heads, axis=-1))

        # single full-depth output projection for the whole row slab
        att = jnp.dot(ctx_ref[...].astype(BF16), wo_ref[...],
                      preferred_element_type=jnp.float32) + bo_ref[...]    # (BB*L, D)

        # --- residual + LayerNorm1 (f32) ---
        x1 = x + att
        mu = jnp.mean(x1, axis=-1, keepdims=True)
        var = jnp.mean((x1 - mu) ** 2, axis=-1, keepdims=True)
        xn = (x1 - mu) * lax.rsqrt(var + EPS) * g1_ref[...] + be1_ref[...]

        # --- FFN (Conv1d k=1 == Linear), chunked over D_FF ---
        xb = xn.astype(BF16)
        bf1 = bf1_ref[...]
        y = None
        for c in range(N_FF_CHUNKS):
            lo = c * FF_CHUNK
            hid = jnp.dot(xb, w1_ref[:, lo:lo + FF_CHUNK],
                          preferred_element_type=jnp.float32) + bf1[:, lo:lo + FF_CHUNK]
            hid = jnp.maximum(hid, 0.0)
            part = jnp.dot(hid.astype(BF16), w2_ref[lo:lo + FF_CHUNK, :],
                           preferred_element_type=jnp.float32)
            y = part if y is None else y + part
        y = y + bf2_ref[...]

        # --- residual + LayerNorm2 (f32) ---
        z = xn + y
        mu2 = jnp.mean(z, axis=-1, keepdims=True)
        var2 = jnp.mean((z - mu2) ** 2, axis=-1, keepdims=True)
        out = (z - mu2) * lax.rsqrt(var2 + EPS) * g2_ref[...] + be2_ref[...]

        out_ref[...] = out.astype(out_ref.dtype)
        # TODO(synk): the torch fp16 inf/nan clamp branch is skipped (f32/bf16 path only).

    return kernel


def pack_cross_layer_params(params):
    """One-time weight packing (transpose, K|V fusion, bf16 cast) hoisted out of
    the per-call wrapper so it is not re-emitted as HBM traffic every forward."""
    return {
        "wq_t": params["wq"].T.astype(jnp.bfloat16),                                   # (D, D)
        "bq": params["bq"].astype(jnp.float32),
        "wkv_t": jnp.concatenate([params["wk"].T, params["wv"].T],
                                 axis=1).astype(jnp.bfloat16),                         # (D, 2D)
        "bkv": jnp.concatenate([params["bk"], params["bv"]], axis=1).astype(jnp.float32),
        "wo_t": params["wo"].T.astype(jnp.bfloat16),                                   # (D, D)
        "bo": params["bo"].astype(jnp.float32),
        "g1": params["g1"].astype(jnp.float32), "be1": params["be1"].astype(jnp.float32),
        "w1_t": params["w1"].T.astype(jnp.bfloat16),                                   # (D, D_FF)
        "bf1": params["bf1"].astype(jnp.float32),
        "w2_t": params["w2"].T.astype(jnp.bfloat16),                                   # (D_FF, D)
        "bf2": params["bf2"].astype(jnp.float32),
        "g2": params["g2"].astype(jnp.float32), "be2": params["be2"].astype(jnp.float32),
    }


def cross_layer_forward(x, cross, packed, n_heads):
    B, L, D = x.shape
    _, S, _ = cross.shape
    D_FF = packed["w1_t"].shape[1]
    assert D % n_heads == 0

    cap = _tpu_vmem_capacity_bytes()
    max_rows = 512 if cap <= (64 << 20) else 2048      # v7x (64 MiB/TC) vs v5e/v6e (128 MiB)
    BB = _choose_batch_block(B, L, S, max_rows)
    grid = (B // BB,)
    FF_CHUNK = _choose_ffn_chunk(D_FF)

    # Lane-dense 2-D activation slabs; cross is only a matmul operand -> ship bf16.
    x2 = x.reshape(B * L, D)
    cr2 = cross.reshape(B * S, D).astype(jnp.bfloat16)
    # TODO(synk): if production D is not a multiple of 128, pad D in the wrapper for a
    # lane-dense output slab (needs masked LayerNorm statistics) — skipped here.

    kernel = make_cross_layer_kernel(BB, L, S, D, D_FF, n_heads, FF_CHUNK)

    # Advisory cost estimate for the XLA scheduler.
    flops = B * (2 * L * D * D                # Q proj
                 + 4 * S * D * D              # fused K/V proj
                 + 4 * L * S * D              # scores + P@V (all heads)
                 + 2 * L * D * D              # out proj
                 + 4 * L * D * D_FF)          # fc1 + fc2
    transcendentals = B * (n_heads * L * S + 2 * L)
    bytes_accessed = (4 * 2 * B * L * D + 2 * B * S * D
                      + 2 * (4 * D * D + 2 * D * D_FF)
                      + 4 * (9 * D + D_FF))

    operands = (x2, cr2,
                packed["wq_t"], packed["bq"], packed["wkv_t"], packed["bkv"],
                packed["wo_t"], packed["bo"], packed["g1"], packed["be1"],
                packed["w1_t"], packed["bf1"], packed["w2_t"], packed["bf2"],
                packed["g2"], packed["be2"])

    def run(single_buffer_weights):
        def const2d(shape):
            if single_buffer_weights:
                # grid-invariant block: fetched once, no need to double-buffer it
                return pl.BlockSpec(shape, lambda i: (0, 0), pipeline_mode=pl.Buffered(1))
            return pl.BlockSpec(shape, lambda i: (0, 0))

        in_specs = [
            pl.BlockSpec((BB * L, D), lambda i: (i, 0)),    # x slab
            pl.BlockSpec((BB * S, D), lambda i: (i, 0)),    # cross slab (bf16)
            const2d((D, D)), const2d((1, D)),               # wq.T, bq
            const2d((D, 2 * D)), const2d((1, 2 * D)),       # [wk.T|wv.T], [bk|bv]
            const2d((D, D)), const2d((1, D)),               # wo.T, bo
            const2d((1, D)), const2d((1, D)),               # norm1 gamma, beta
            const2d((D, D_FF)), const2d((1, D_FF)),         # fc1 W.T, b
            const2d((D_FF, D)), const2d((1, D)),            # fc2 W.T, b
            const2d((1, D)), const2d((1, D)),               # norm2 gamma, beta
        ]
        out_spec = pl.BlockSpec((BB * L, D), lambda i: (i, 0))

        return pl.pallas_call(
            kernel,
            out_shape=jax.ShapeDtypeStruct((B * L, D), x.dtype),
            grid_spec=pltpu.PrefetchScalarGridSpec(
                num_scalar_prefetch=0,
                grid=grid,
                in_specs=in_specs,
                out_specs=out_spec,
                scratch_shapes=[pltpu.VMEM((BB * L, D), jnp.float32)],   # per-head context
            ),
            compiler_params=pltpu.CompilerParams(
                dimension_semantics=("parallel",),
                vmem_limit_bytes=_vmem_limit_bytes(BB, L, S, D, D_FF, FF_CHUNK, cap),
            ),
            cost_estimate=pl.CostEstimate(
                flops=int(flops),
                transcendentals=int(transcendentals),
                bytes_accessed=int(bytes_accessed),
            ),
        )(*operands)

    try:
        out2 = run(single_buffer_weights=True)
    except Exception:
        # pipeline_mode=pl.Buffered(1) unsupported on this jax version -> default specs
        out2 = run(single_buffer_weights=False)
    return out2.reshape(B, L, D)


def reference_forward(x, cross, params, n_heads):
    """Pure-JAX f32 reference mirroring the PyTorch CrossLayer (eval mode)."""
    B, L, D = x.shape
    _, S, _ = cross.shape
    H = n_heads
    E = D // H
    scale = 1.0 / math.sqrt(E)

    def lin(a, w, b):  # nn.Linear
        return a @ w.T + b[0]

    q = lin(x, params["wq"], params["bq"]).reshape(B, L, H, E)
    k = lin(cross, params["wk"], params["bk"]).reshape(B, S, H, E)
    v = lin(cross, params["wv"], params["bv"]).reshape(B, S, H, E)
    scores = jnp.einsum("blhe,bshe->bhls", q, k)
    A = jax.nn.softmax(scale * scores, axis=-1)
    V = jnp.einsum("bhls,bshd->blhd", A, v).reshape(B, L, D)
    att = lin(V, params["wo"], params["bo"])

    x1 = x + att

    def ln(a, g, b):
        mu = jnp.mean(a, axis=-1, keepdims=True)
        var = jnp.mean((a - mu) ** 2, axis=-1, keepdims=True)
        return (a - mu) / jnp.sqrt(var + 1e-5) * g[0] + b[0]

    xn = ln(x1, params["g1"], params["be1"])
    y = jnp.maximum(lin(xn, params["w1"], params["bf1"]), 0.0)
    y = lin(y, params["w2"], params["bf2"])
    return ln(xn + y, params["g2"], params["be2"])


if __name__ == "__main__":
    # small shapes consistent with the module: d_model divisible by n_heads=6
    B, L, S = 2, 8, 16
    D_MODEL, N_HEADS = 48, 6
    D_FF = 4 * D_MODEL

    key = jax.random.PRNGKey(0)
    ks = jax.random.split(key, 16)

    def w(k, shape, scale=0.05):
        return (scale * jax.random.normal(k, shape)).astype(jnp.float32)

    params = {
        "wq": w(ks[0], (D_MODEL, D_MODEL)), "bq": w(ks[1], (1, D_MODEL)),
        "wk": w(ks[2], (D_MODEL, D_MODEL)), "bk": w(ks[3], (1, D_MODEL)),
        "wv": w(ks[4], (D_MODEL, D_MODEL)), "bv": w(ks[5], (1, D_MODEL)),
        "wo": w(ks[6], (D_MODEL, D_MODEL)), "bo": w(ks[7], (1, D_MODEL)),
        "g1": jnp.ones((1, D_MODEL), jnp.float32),
        "be1": jnp.zeros((1, D_MODEL), jnp.float32),
        # Conv1d(d_model, d_ff, 1).weight squeezed from (d_ff, d_model, 1) -> (d_ff, d_model)
        "w1": w(ks[8], (D_FF, D_MODEL)), "bf1": w(ks[9], (1, D_FF)),
        "w2": w(ks[10], (D_MODEL, D_FF)), "bf2": w(ks[11], (1, D_MODEL)),
        "g2": jnp.ones((1, D_MODEL), jnp.float32),
        "be2": jnp.zeros((1, D_MODEL), jnp.float32),
    }

    x = jax.random.normal(ks[12], (B, L, D_MODEL), jnp.float32)
    cross = jax.random.normal(ks[13], (B, S, D_MODEL), jnp.float32)

    packed = pack_cross_layer_params(params)       # one-time packing, outside the forward
    out = cross_layer_forward(x, cross, packed, N_HEADS)
    out = jax.block_until_ready(out)

    ref = reference_forward(x, cross, params, N_HEADS)
    assert out.shape == (B, L, D_MODEL)
    # bf16 matmul operands (f32 accumulation) vs. a pure-f32 reference -> looser tolerance.
    assert jnp.allclose(out, ref, atol=5e-2, rtol=5e-2), "mismatch vs JAX reference"

    print("KERNEL_OK")
</pallas_src>

<mosaic_0001>
module attributes {stable_mosaic.version = 11 : i64} {
  func.func @kernel(%arg0: i32, %arg1: memref<8x48xf32, #tpu.memory_space<vmem>>, %arg2: memref<16x48xbf16, #tpu.memory_space<vmem>>, %arg3: memref<48x48xbf16, #tpu.memory_space<vmem>>, %arg4: memref<1x48xf32, #tpu.memory_space<vmem>>, %arg5: memref<48x96xbf16, #tpu.memory_space<vmem>>, %arg6: memref<1x96xf32, #tpu.memory_space<vmem>>, %arg7: memref<48x48xbf16, #tpu.memory_space<vmem>>, %arg8: memref<1x48xf32, #tpu.memory_space<vmem>>, %arg9: memref<1x48xf32, #tpu.memory_space<vmem>>, %arg10: memref<1x48xf32, #tpu.memory_space<vmem>>, %arg11: memref<48x192xbf16, #tpu.memory_space<vmem>>, %arg12: memref<1x192xf32, #tpu.memory_space<vmem>>, %arg13: memref<192x48xbf16, #tpu.memory_space<vmem>>, %arg14: memref<1x48xf32, #tpu.memory_space<vmem>>, %arg15: memref<1x48xf32, #tpu.memory_space<vmem>>, %arg16: memref<1x48xf32, #tpu.memory_space<vmem>>, %arg17: memref<8x48xf32, #tpu.memory_space<vmem>>, %arg18: memref<8x48xf32, #tpu.memory_space<vmem>>) attributes {dimension_semantics = [#tpu.dimension_semantics<parallel>], iteration_bounds = array<i64: 2>, scalar_prefetch = 0 : i64, scratch_operands = 1 : i64, tpu.core_type = #tpu.core_type<tc>, window_params = [{transform_indices = @transform_0, window_bounds = array<i64: 8, 48>}, {transform_indices = @transform_1, window_bounds = array<i64: 16, 48>}, {pipeline_mode = #tpu.pipeline_mode<synchronous>, transform_indices = @transform_2, window_bounds = array<i64: 48, 48>}, {pipeline_mode = #tpu.pipeline_mode<synchronous>, transform_indices = @transform_3, window_bounds = array<i64: 1, 48>}, {pipeline_mode = #tpu.pipeline_mode<synchronous>, transform_indices = @transform_4, window_bounds = array<i64: 48, 96>}, {pipeline_mode = #tpu.pipeline_mode<synchronous>, transform_indices = @transform_5, window_bounds = array<i64: 1, 96>}, {pipeline_mode = #tpu.pipeline_mode<synchronous>, transform_indices = @transform_6, window_bounds = array<i64: 48, 48>}, {pipeline_mode = #tpu.pipeline_mode<synchronous>, transform_indices = @transform_7, window_bounds = array<i64: 1, 48>}, {pipeline_mode = #tpu.pipeline_mode<synchronous>, transform_indices = @transform_8, window_bounds = array<i64: 1, 48>}, {pipeline_mode = #tpu.pipeline_mode<synchronous>, transform_indices = @transform_9, window_bounds = array<i64: 1, 48>}, {pipeline_mode = #tpu.pipeline_mode<synchronous>, transform_indices = @transform_10, window_bounds = array<i64: 48, 192>}, {pipeline_mode = #tpu.pipeline_mode<synchronous>, transform_indices = @transform_11, window_bounds = array<i64: 1, 192>}, {pipeline_mode = #tpu.pipeline_mode<synchronous>, transform_indices = @transform_12, window_bounds = array<i64: 192, 48>}, {pipeline_mode = #tpu.pipeline_mode<synchronous>, transform_indices = @transform_13, window_bounds = array<i64: 1, 48>}, {pipeline_mode = #tpu.pipeline_mode<synchronous>, transform_indices = @transform_14, window_bounds = array<i64: 1, 48>}, {pipeline_mode = #tpu.pipeline_mode<synchronous>, transform_indices = @transform_15, window_bounds = array<i64: 1, 48>}, {transform_indices = @transform_16, window_bounds = array<i64: 8, 48>}]} {
    %c0 = arith.constant 0 : index
    %c0_0 = arith.constant 0 : index
    %0 = vector.load %arg1[%c0, %c0_0] : memref<8x48xf32, #tpu.memory_space<vmem>>, vector<8x48xf32>
    %c0_1 = arith.constant 0 : index
    %c0_2 = arith.constant 0 : index
    %1 = vector.load %arg2[%c0_1, %c0_2] : memref<16x48xbf16, #tpu.memory_space<vmem>>, vector<16x48xbf16>
    %2 = arith.truncf %0 : vector<8x48xf32> to vector<8x48xbf16>
    %c0_3 = arith.constant 0 : index
    %c0_4 = arith.constant 0 : index
    %3 = vector.load %arg3[%c0_3, %c0_4] : memref<48x48xbf16, #tpu.memory_space<vmem>>, vector<48x48xbf16>
    %cst = arith.constant dense<0.000000e+00> : vector<8x48xf32>
    %4 = tpu.matmul %2, %3, %cst {dimension_numbers = #tpu.dot_dimension_numbers<[1], [0], [0], [1], [0, 0, 1, 1], [], []>} : vector<8x48xbf16>, vector<48x48xbf16>, vector<8x48xf32> -> vector<8x48xf32>
    %c0_5 = arith.constant 0 : index
    %c0_6 = arith.constant 0 : index
    %5 = vector.load %arg4[%c0_5, %c0_6] : memref<1x48xf32, #tpu.memory_space<vmem>>, vector<1x48xf32>
    %6 = vector.broadcast %5 : vector<1x48xf32> to vector<8x48xf32>
    %7 = arith.addf %4, %6 : vector<8x48xf32>
    %c0_7 = arith.constant 0 : index
    %c0_8 = arith.constant 0 : index
    %8 = vector.load %arg5[%c0_7, %c0_8] : memref<48x96xbf16, #tpu.memory_space<vmem>>, vector<48x96xbf16>
    %cst_9 = arith.constant dense<0.000000e+00> : vector<16x96xf32>
    %9 = tpu.matmul %1, %8, %cst_9 {dimension_numbers = #tpu.dot_dimension_numbers<[1], [0], [0], [1], [0, 0, 1, 1], [], []>} : vector<16x48xbf16>, vector<48x96xbf16>, vector<16x96xf32> -> vector<16x96xf32>
    %c0_10 = arith.constant 0 : index
    %c0_11 = arith.constant 0 : index
    %10 = vector.load %arg6[%c0_10, %c0_11] : memref<1x96xf32, #tpu.memory_space<vmem>>, vector<1x96xf32>
    %11 = vector.broadcast %10 : vector<1x96xf32> to vector<16x96xf32>
    %12 = arith.addf %9, %11 : vector<16x96xf32>
    %13 = arith.truncf %7 : vector<8x48xf32> to vector<8x48xbf16>
    %14 = arith.truncf %12 : vector<16x96xf32> to vector<16x96xbf16>
    %15 = vector.extract_strided_slice %13 {offsets = [0, 0], sizes = [8, 8], strides = [1, 1]} : vector<8x48xbf16> to vector<8x8xbf16>
    %16 = vector.extract_strided_slice %14 {offsets = [0, 0], sizes = [16, 8], strides = [1, 1]} : vector<16x96xbf16> to vector<16x8xbf16>
    %17 = vector.extract_strided_slice %14 {offsets = [0, 48], sizes = [16, 8], strides = [1, 1]} : vector<16x96xbf16> to vector<16x8xbf16>
    %cst_12 = arith.constant dense<0.000000e+00> : vector<8x16xf32>
    %18 = tpu.matmul %15, %16, %cst_12 {dimension_numbers = #tpu.dot_dimension_numbers<[1], [1], [0], [0], [0, 0, 1, 0], [], []>} : vector<8x8xbf16>, vector<16x8xbf16>, vector<8x16xf32> -> vector<8x16xf32>
    %cst_13 = arith.constant 0.353553385 : f32
    %19 = vector.broadcast %cst_13 : f32 to vector<8x16xf32>
    %20 = arith.mulf %18, %19 : vector<8x16xf32>
    %cst_14 = arith.constant dense<0xFF800000> : vector<8xf32>
    %21 = vector.multi_reduction <maximumf>, %20, %cst_14 [1] : vector<8x16xf32> to vector<8xf32>
    %22 = vector.shape_cast %21 : vector<8xf32> to vector<8x1xf32>
    %23 = vector.broadcast %22 : vector<8x1xf32> to vector<8x16xf32>
    %24 = arith.subf %20, %23 : vector<8x16xf32>
    %25 = math.exp %24 : vector<8x16xf32>
    %cst_15 = arith.constant dense<0.000000e+00> : vector<8xf32>
    %26 = vector.multi_reduction <add>, %25, %cst_15 [1] : vector<8x16xf32> to vector<8xf32>
    %27 = vector.shape_cast %26 : vector<8xf32> to vector<8x1xf32>
    %28 = tpu.reciprocal %27 {approx = true} : vector<8x1xf32> -> vector<8x1xf32>
    %29 = vector.broadcast %28 : vector<8x1xf32> to vector<8x16xf32>
    %30 = arith.mulf %25, %29 : vector<8x16xf32>
    %31 = arith.truncf %30 : vector<8x16xf32> to vector<8x16xbf16>
    %cst_16 = arith.constant dense<0.000000e+00> : vector<8x8xf32>
    %32 = tpu.matmul %31, %17, %cst_16 {dimension_numbers = #tpu.dot_dimension_numbers<[1], [0], [0], [1], [0, 0, 1, 1], [], []>} : vector<8x16xbf16>, vector<16x8xbf16>, vector<8x8xf32> -> vector<8x8xf32>
    %33 = vector.extract_strided_slice %13 {offsets = [0, 8], sizes = [8, 8], strides = [1, 1]} : vector<8x48xbf16> to vector<8x8xbf16>
    %34 = vector.extract_strided_slice %14 {offsets = [0, 8], sizes = [16, 8], strides = [1, 1]} : vector<16x96xbf16> to vector<16x8xbf16>
    %35 = vector.extract_strided_slice %14 {offsets = [0, 56], sizes = [16, 8], strides = [1, 1]} : vector<16x96xbf16> to vector<16x8xbf16>
    %cst_17 = arith.constant dense<0.000000e+00> : vector<8x16xf32>
    %36 = tpu.matmul %33, %34, %cst_17 {dimension_numbers = #tpu.dot_dimension_numbers<[1], [1], [0], [0], [0, 0, 1, 0], [], []>} : vector<8x8xbf16>, vector<16x8xbf16>, vector<8x16xf32> -> vector<8x16xf32>
    %cst_18 = arith.constant 0.353553385 : f32
    %37 = vector.broadcast %cst_18 : f32 to vector<8x16xf32>
    %38 = arith.mulf %36, %37 : vector<8x16xf32>
    %cst_19 = arith.constant dense<0xFF800000> : vector<8xf32>
    %39 = vector.multi_reduction <maximumf>, %38, %cst_19 [1] : vector<8x16xf32> to vector<8xf32>
    %40 = vector.shape_cast %39 : vector<8xf32> to vector<8x1xf32>
    %41 = vector.broadcast %40 : vector<8x1xf32> to vector<8x16xf32>
    %42 = arith.subf %38, %41 : vector<8x16xf32>
    %43 = math.exp %42 : vector<8x16xf32>
    %cst_20 = arith.constant dense<0.000000e+00> : vector<8xf32>
    %44 = vector.multi_reduction <add>, %43, %cst_20 [1] : vector<8x16xf32> to vector<8xf32>
    %45 = vector.shape_cast %44 : vector<8xf32> to vector<8x1xf32>
    %46 = tpu.reciprocal %45 {approx = true} : vector<8x1xf32> -> vector<8x1xf32>
    %47 = vector.broadcast %46 : vector<8x1xf32> to vector<8x16xf32>
    %48 = arith.mulf %43, %47 : vector<8x16xf32>
    %49 = arith.truncf %48 : vector<8x16xf32> to vector<8x16xbf16>
    %cst_21 = arith.constant dense<0.000000e+00> : vector<8x8xf32>
    %50 = tpu.matmul %49, %35, %cst_21 {dimension_numbers = #tpu.dot_dimension_numbers<[1], [0], [0], [1], [0, 0, 1, 1], [], []>} : vector<8x16xbf16>, vector<16x8xbf16>, vector<8x8xf32> -> vector<8x8xf32>
    %51 = vector.extract_strided_slice %13 {offsets = [0, 16], sizes = [8, 8], strides = [1, 1]} : vector<8x48xbf16> to vector<8x8xbf16>
    %52 = vector.extract_strided_slice %14 {offsets = [0, 16], sizes = [16, 8], strides = [1, 1]} : vector<16x96xbf16> to vector<16x8xbf16>
    %53 = vector.extract_strided_slice %14 {offsets = [0, 64], sizes = [16, 8], strides = [1, 1]} : vector<16x96xbf16> to vector<16x8xbf16>
    %cst_22 = arith.constant dense<0.000000e+00> : vector<8x16xf32>
    %54 = tpu.matmul %51, %52, %cst_22 {dimension_numbers = #tpu.dot_dimension_numbers<[1], [1], [0], [0], [0, 0, 1, 0], [], []>} : vector<8x8xbf16>, vector<16x8xbf16>, vector<8x16xf32> -> vector<8x16xf32>
    %cst_23 = arith.constant 0.353553385 : f32
    %55 = vector.broadcast %cst_23 : f32 to vector<8x16xf32>
    %56 = arith.mulf %54, %55 : vector<8x16xf32>
    %cst_24 = arith.constant dense<0xFF800000> : vector<8xf32>
    %57 = vector.multi_reduction <maximumf>, %56, %cst_24 [1] : vector<8x16xf32> to vector<8xf32>
    %58 = vector.shape_cast %57 : vector<8xf32> to vector<8x1xf32>
    %59 = vector.broadcast %58 : vector<8x1xf32> to vector<8x16xf32>
    %60 = arith.subf %56, %59 : vector<8x16xf32>
    %61 = math.exp %60 : vector<8x16xf32>
    %cst_25 = arith.constant dense<0.000000e+00> : vector<8xf32>
    %62 = vector.multi_reduction <add>, %61, %cst_25 [1] : vector<8x16xf32> to vector<8xf32>
    %63 = vector.shape_cast %62 : vector<8xf32> to vector<8x1xf32>
    %64 = tpu.reciprocal %63 {approx = true} : vector<8x1xf32> -> vector<8x1xf32>
    %65 = vector.broadcast %64 : vector<8x1xf32> to vector<8x16xf32>
    %66 = arith.mulf %61, %65 : vector<8x16xf32>
    %67 = arith.truncf %66 : vector<8x16xf32> to vector<8x16xbf16>
    %cst_26 = arith.constant dense<0.000000e+00> : vector<8x8xf32>
    %68 = tpu.matmul %67, %53, %cst_26 {dimension_numbers = #tpu.dot_dimension_numbers<[1], [0], [0], [1], [0, 0, 1, 1], [], []>} : vector<8x16xbf16>, vector<16x8xbf16>, vector<8x8xf32> -> vector<8x8xf32>
    %69 = vector.extract_strided_slice %13 {offsets = [0, 24], sizes = [8, 8], strides = [1, 1]} : vector<8x48xbf16> to vector<8x8xbf16>
    %70 = vector.extract_strided_slice %14 {offsets = [0, 24], sizes = [16, 8], strides = [1, 1]} : vector<16x96xbf16> to vector<16x8xbf16>
    %71 = vector.extract_strided_slice %14 {offsets = [0, 72], sizes = [16, 8], strides = [1, 1]} : vector<16x96xbf16> to vector<16x8xbf16>
    %cst_27 = arith.constant dense<0.000000e+00> : vector<8x16xf32>
    %72 = tpu.matmul %69, %70, %cst_27 {dimension_numbers = #tpu.dot_dimension_numbers<[1], [1], [0], [0], [0, 0, 1, 0], [], []>} : vector<8x8xbf16>, vector<16x8xbf16>, vector<8x16xf32> -> vector<8x16xf32>
    %cst_28 = arith.constant 0.353553385 : f32
    %73 = vector.broadcast %cst_28 : f32 to vector<8x16xf32>
    %74 = arith.mulf %72, %73 : vector<8x16xf32>
    %cst_29 = arith.constant dense<0xFF800000> : vector<8xf32>
    %75 = vector.multi_reduction <maximumf>, %74, %cst_29 [1] : vector<8x16xf32> to vector<8xf32>
    %76 = vector.shape_cast %75 : vector<8xf32> to vector<8x1xf32>
    %77 = vector.broadcast %76 : vector<8x1xf32> to vector<8x16xf32>
    %78 = arith.subf %74, %77 : vector<8x16xf32>
    %79 = math.exp %78 : vector<8x16xf32>
    %cst_30 = arith.constant dense<0.000000e+00> : vector<8xf32>
    %80 = vector.multi_reduction <add>, %79, %cst_30 [1] : vector<8x16xf32> to vector<8xf32>
    %81 = vector.shape_cast %80 : vector<8xf32> to vector<8x1xf32>
    %82 = tpu.reciprocal %81 {approx = true} : vector<8x1xf32> -> vector<8x1xf32>
    %83 = vector.broadcast %82 : vector<8x1xf32> to vector<8x16xf32>
    %84 = arith.mulf %79, %83 : vector<8x16xf32>
    %85 = arith.truncf %84 : vector<8x16xf32> to vector<8x16xbf16>
    %cst_31 = arith.constant dense<0.000000e+00> : vector<8x8xf32>
    %86 = tpu.matmul %85, %71, %cst_31 {dimension_numbers = #tpu.dot_dimension_numbers<[1], [0], [0], [1], [0, 0, 1, 1], [], []>} : vector<8x16xbf16>, vector<16x8xbf16>, vector<8x8xf32> -> vector<8x8xf32>
    %87 = vector.extract_strided_slice %13 {offsets = [0, 32], sizes = [8, 8], strides = [1, 1]} : vector<8x48xbf16> to vector<8x8xbf16>
    %88 = vector.extract_strided_slice %14 {offsets = [0, 32], sizes = [16, 8], strides = [1, 1]} : vector<16x96xbf16> to vector<16x8xbf16>
    %89 = vector.extract_strided_slice %14 {offsets = [0, 80], sizes = [16, 8], strides = [1, 1]} : vector<16x96xbf16> to vector<16x8xbf16>
    %cst_32 = arith.constant dense<0.000000e+00> : vector<8x16xf32>
    %90 = tpu.matmul %87, %88, %cst_32 {dimension_numbers = #tpu.dot_dimension_numbers<[1], [1], [0], [0], [0, 0, 1, 0], [], []>} : vector<8x8xbf16>, vector<16x8xbf16>, vector<8x16xf32> -> vector<8x16xf32>
    %cst_33 = arith.constant 0.353553385 : f32
    %91 = vector.broadcast %cst_33 : f32 to vector<8x16xf32>
    %92 = arith.mulf %90, %91 : vector<8x16xf32>
    %cst_34 = arith.constant dense<0xFF800000> : vector<8xf32>
    %93 = vector.multi_reduction <maximumf>, %92, %cst_34 [1] : vector<8x16xf32> to vector<8xf32>
    %94 = vector.shape_cast %93 : vector<8xf32> to vector<8x1xf32>
    %95 = vector.broadcast %94 : vector<8x1xf32> to vector<8x16xf32>
    %96 = arith.subf %92, %95 : vector<8x16xf32>
    %97 = math.exp %96 : vector<8x16xf32>
    %cst_35 = arith.constant dense<0.000000e+00> : vector<8xf32>
    %98 = vector.multi_reduction <add>, %97, %cst_35 [1] : vector<8x16xf32> to vector<8xf32>
    %99 = vector.shape_cast %98 : vector<8xf32> to vector<8x1xf32>
    %100 = tpu.reciprocal %99 {approx = true} : vector<8x1xf32> -> vector<8x1xf32>
    %101 = vector.broadcast %100 : vector<8x1xf32> to vector<8x16xf32>
    %102 = arith.mulf %97, %101 : vector<8x16xf32>
    %103 = arith.truncf %102 : vector<8x16xf32> to vector<8x16xbf16>
    %cst_36 = arith.constant dense<0.000000e+00> : vector<8x8xf32>
    %104 = tpu.matmul %103, %89, %cst_36 {dimension_numbers = #tpu.dot_dimension_numbers<[1], [0], [0], [1], [0, 0, 1, 1], [], []>} : vector<8x16xbf16>, vector<16x8xbf16>, vector<8x8xf32> -> vector<8x8xf32>
    %105 = vector.extract_strided_slice %13 {offsets = [0, 40], sizes = [8, 8], strides = [1, 1]} : vector<8x48xbf16> to vector<8x8xbf16>
    %106 = vector.extract_strided_slice %14 {offsets = [0, 40], sizes = [16, 8], strides = [1, 1]} : vector<16x96xbf16> to vector<16x8xbf16>
    %107 = vector.extract_strided_slice %14 {offsets = [0, 88], sizes = [16, 8], strides = [1, 1]} : vector<16x96xbf16> to vector<16x8xbf16>
    %cst_37 = arith.constant dense<0.000000e+00> : vector<8x16xf32>
    %108 = tpu.matmul %105, %106, %cst_37 {dimension_numbers = #tpu.dot_dimension_numbers<[1], [1], [0], [0], [0, 0, 1, 0], [], []>} : vector<8x8xbf16>, vector<16x8xbf16>, vector<8x16xf32> -> vector<8x16xf32>
    %cst_38 = arith.constant 0.353553385 : f32
    %109 = vector.broadcast %cst_38 : f32 to vector<8x16xf32>
    %110 = arith.mulf %108, %109 : vector<8x16xf32>
    %cst_39 = arith.constant dense<0xFF800000> : vector<8xf32>
    %111 = vector.multi_reduction <maximumf>, %110, %cst_39 [1] : vector<8x16xf32> to vector<8xf32>
    %112 = vector.shape_cast %111 : vector<8xf32> to vector<8x1xf32>
    %113 = vector.broadcast %112 : vector<8x1xf32> to vector<8x16xf32>
    %114 = arith.subf %110, %113 : vector<8x16xf32>
    %115 = math.exp %114 : vector<8x16xf32>
    %cst_40 = arith.constant dense<0.000000e+00> : vector<8xf32>
    %116 = vector.multi_reduction <add>, %115, %cst_40 [1] : vector<8x16xf32> to vector<8xf32>
    %117 = vector.shape_cast %116 : vector<8xf32> to vector<8x1xf32>
    %118 = tpu.reciprocal %117 {approx = true} : vector<8x1xf32> -> vector<8x1xf32>
    %119 = vector.broadcast %118 : vector<8x1xf32> to vector<8x16xf32>
    %120 = arith.mulf %115, %119 : vector<8x16xf32>
    %121 = arith.truncf %120 : vector<8x16xf32> to vector<8x16xbf16>
    %cst_41 = arith.constant dense<0.000000e+00> : vector<8x8xf32>
    %122 = tpu.matmul %121, %107, %cst_41 {dimension_numbers = #tpu.dot_dimension_numbers<[1], [0], [0], [1], [0, 0, 1, 1], [], []>} : vector<8x16xbf16>, vector<16x8xbf16>, vector<8x8xf32> -> vector<8x8xf32>
    %123 = tpu.concatenate %32, %50, %68, %86, %104, %122 in 1 : vector<8x8xf32>, vector<8x8xf32>, vector<8x8xf32>, vector<8x8xf32>, vector<8x8xf32>, vector<8x8xf32> -> vector<8x48xf32>
    %c0_42 = arith.constant 0 : index
    %c0_43 = arith.constant 0 : index
    %124 = vector.load %arg18[%c0_42, %c0_43] : memref<8x48xf32, #tpu.memory_space<vmem>>, vector<8x48xf32>
    tpu.vector_store %arg18[%c0_42, %c0_43], %123 {strides = array<i32>} : memref<8x48xf32, #tpu.memory_space<vmem>>, vector<8x48xf32>,
    %c0_44 = arith.constant 0 : index
    %c0_45 = arith.constant 0 : index
    %125 = vector.load %arg18[%c0_44, %c0_45] : memref<8x48xf32, #tpu.memory_space<vmem>>, vector<8x48xf32>
    %126 = arith.truncf %125 : vector<8x48xf32> to vector<8x48xbf16>
    %c0_46 = arith.constant 0 : index
    %c0_47 = arith.constant 0 : index
    %127 = vector.load %arg7[%c0_46, %c0_47] : memref<48x48xbf16, #tpu.memory_space<vmem>>, vector<48x48xbf16>
    %cst_48 = arith.constant dense<0.000000e+00> : vector<8x48xf32>
    %128 = tpu.matmul %126, %127, %cst_48 {dimension_numbers = #tpu.dot_dimension_numbers<[1], [0], [0], [1], [0, 0, 1, 1], [], []>} : vector<8x48xbf16>, vector<48x48xbf16>, vector<8x48xf32> -> vector<8x48xf32>
    %c0_49 = arith.constant 0 : index
    %c0_50 = arith.constant 0 : index
    %129 = vector.load %arg8[%c0_49, %c0_50] : memref<1x48xf32, #tpu.memory_space<vmem>>, vector<1x48xf32>
    %130 = vector.broadcast %129 : vector<1x48xf32> to vector<8x48xf32>
    %131 = arith.addf %128, %130 : vector<8x48xf32>
    %132 = arith.addf %0, %131 : vector<8x48xf32>
    %cst_51 = arith.constant dense<0.000000e+00> : vector<8xf32>
    %133 = vector.multi_reduction <add>, %132, %cst_51 [1] : vector<8x48xf32> to vector<8xf32>
    %134 = vector.shape_cast %133 : vector<8xf32> to vector<8x1xf32>
    %cst_52 = arith.constant 4.800000e+01 : f32
    %135 = vector.broadcast %cst_52 : f32 to vector<8x1xf32>
    %136 = arith.divf %134, %135 : vector<8x1xf32>
    %137 = vector.broadcast %136 : vector<8x1xf32> to vector<8x48xf32>
    %138 = arith.subf %132, %137 : vector<8x48xf32>
    %139 = arith.mulf %138, %138 : vector<8x48xf32>
    %cst_53 = arith.constant dense<0.000000e+00> : vector<8xf32>
    %140 = vector.multi_reduction <add>, %139, %cst_53 [1] : vector<8x48xf32> to vector<8xf32>
    %141 = vector.shape_cast %140 : vector<8xf32> to vector<8x1xf32>
    %cst_54 = arith.constant 4.800000e+01 : f32
    %142 = vector.broadcast %cst_54 : f32 to vector<8x1xf32>
    %143 = arith.divf %141, %142 : vector<8x1xf32>
    %144 = vector.broadcast %136 : vector<8x1xf32> to vector<8x48xf32>
    %145 = arith.subf %132, %144 : vector<8x48xf32>
    %cst_55 = arith.constant 9.99999974E-6 : f32
    %146 = vector.broadcast %cst_55 : f32 to vector<8x1xf32>
    %147 = arith.addf %143, %146 : vector<8x1xf32>
    %148 = math.rsqrt %147 : vector<8x1xf32>
    %149 = vector.broadcast %148 : vector<8x1xf32> to vector<8x48xf32>
    %150 = arith.mulf %145, %149 : vector<8x48xf32>
    %c0_56 = arith.constant 0 : index
    %c0_57 = arith.constant 0 : index
    %151 = vector.load %arg9[%c0_56, %c0_57] : memref<1x48xf32, #tpu.memory_space<vmem>>, vector<1x48xf32>
    %152 = vector.broadcast %151 : vector<1x48xf32> to vector<8x48xf32>
    %153 = arith.mulf %150, %152 : vector<8x48xf32>
    %c0_58 = arith.constant 0 : index
    %c0_59 = arith.constant 0 : index
    %154 = vector.load %arg10[%c0_58, %c0_59] : memref<1x48xf32, #tpu.memory_space<vmem>>, vector<1x48xf32>
    %155 = vector.broadcast %154 : vector<1x48xf32> to vector<8x48xf32>
    %156 = arith.addf %153, %155 : vector<8x48xf32>
    %157 = arith.truncf %156 : vector<8x48xf32> to vector<8x48xbf16>
    %c0_60 = arith.constant 0 : index
    %c0_61 = arith.constant 0 : index
    %158 = vector.load %arg12[%c0_60, %c0_61] : memref<1x192xf32, #tpu.memory_space<vmem>>, vector<1x192xf32>
    %c0_62 = arith.constant 0 : index
    %c0_63 = arith.constant 0 : index
    %159 = vector.load %arg11[%c0_62, %c0_63] : memref<48x192xbf16, #tpu.memory_space<vmem>>, vector<48x192xbf16>
    %cst_64 = arith.constant dense<0.000000e+00> : vector<8x192xf32>
    %160 = tpu.matmul %157, %159, %cst_64 {dimension_numbers = #tpu.dot_dimension_numbers<[1], [0], [0], [1], [0, 0, 1, 1], [], []>} : vector<8x48xbf16>, vector<48x192xbf16>, vector<8x192xf32> -> vector<8x192xf32>
    %161 = vector.broadcast %158 : vector<1x192xf32> to vector<8x192xf32>
    %162 = arith.addf %160, %161 : vector<8x192xf32>
    %cst_65 = arith.constant 0.000000e+00 : f32
    %163 = vector.broadcast %cst_65 : f32 to vector<8x192xf32>
    %164 = arith.maximumf %162, %163 : vector<8x192xf32>
    %165 = arith.truncf %164 : vector<8x192xf32> to vector<8x192xbf16>
    %c0_66 = arith.constant 0 : index
    %c0_67 = arith.constant 0 : index
    %166 = vector.load %arg13[%c0_66, %c0_67] : memref<192x48xbf16, #tpu.memory_space<vmem>>, vector<192x48xbf16>
    %cst_68 = arith.constant dense<0.000000e+00> : vector<8x48xf32>
    %167 = tpu.matmul %165, %166, %cst_68 {dimension_numbers = #tpu.dot_dimension_numbers<[1], [0], [0], [1], [0, 0, 1, 1], [], []>} : vector<8x192xbf16>, vector<192x48xbf16>, vector<8x48xf32> -> vector<8x48xf32>
    %c0_69 = arith.constant 0 : index
    %c0_70 = arith.constant 0 : index
    %168 = vector.load %arg14[%c0_69, %c0_70] : memref<1x48xf32, #tpu.memory_space<vmem>>, vector<1x48xf32>
    %169 = vector.broadcast %168 : vector<1x48xf32> to vector<8x48xf32>
    %170 = arith.addf %167, %169 : vector<8x48xf32>
    %171 = arith.addf %156, %170 : vector<8x48xf32>
    %cst_71 = arith.constant dense<0.000000e+00> : vector<8xf32>
    %172 = vector.multi_reduction <add>, %171, %cst_71 [1] : vector<8x48xf32> to vector<8xf32>
    %173 = vector.shape_cast %172 : vector<8xf32> to vector<8x1xf32>
    %cst_72 = arith.constant 4.800000e+01 : f32
    %174 = vector.broadcast %cst_72 : f32 to vector<8x1xf32>
    %175 = arith.divf %173, %174 : vector<8x1xf32>
    %176 = vector.broadcast %175 : vector<8x1xf32> to vector<8x48xf32>
    %177 = arith.subf %171, %176 : vector<8x48xf32>
    %178 = arith.mulf %177, %177 : vector<8x48xf32>
    %cst_73 = arith.constant dense<0.000000e+00> : vector<8xf32>
    %179 = vector.multi_reduction <add>, %178, %cst_73 [1] : vector<8x48xf32> to vector<8xf32>
    %180 = vector.shape_cast %179 : vector<8xf32> to vector<8x1xf32>
    %cst_74 = arith.constant 4.800000e+01 : f32
    %181 = vector.broadcast %cst_74 : f32 to vector<8x1xf32>
    %182 = arith.divf %180, %181 : vector<8x1xf32>
    %183 = vector.broadcast %175 : vector<8x1xf32> to vector<8x48xf32>
    %184 = arith.subf %171, %183 : vector<8x48xf32>
    %cst_75 = arith.constant 9.99999974E-6 : f32
    %185 = vector.broadcast %cst_75 : f32 to vector<8x1xf32>
    %186 = arith.addf %182, %185 : vector<8x1xf32>
    %187 = math.rsqrt %186 : vector<8x1xf32>
    %188 = vector.broadcast %187 : vector<8x1xf32> to vector<8x48xf32>
    %189 = arith.mulf %184, %188 : vector<8x48xf32>
    %c0_76 = arith.constant 0 : index
    %c0_77 = arith.constant 0 : index
    %190 = vector.load %arg15[%c0_76, %c0_77] : memref<1x48xf32, #tpu.memory_space<vmem>>, vector<1x48xf32>
    %191 = vector.broadcast %190 : vector<1x48xf32> to vector<8x48xf32>
    %192 = arith.mulf %189, %191 : vector<8x48xf32>
    %c0_78 = arith.constant 0 : index
    %c0_79 = arith.constant 0 : index
    %193 = vector.load %arg16[%c0_78, %c0_79] : memref<1x48xf32, #tpu.memory_space<vmem>>, vector<1x48xf32>
    %194 = vector.broadcast %193 : vector<1x48xf32> to vector<8x48xf32>
    %195 = arith.addf %192, %194 : vector<8x48xf32>
    %c0_80 = arith.constant 0 : index
    %c0_81 = arith.constant 0 : index
    %196 = vector.load %arg17[%c0_80, %c0_81] : memref<8x48xf32, #tpu.memory_space<vmem>>, vector<8x48xf32>
    tpu.vector_store %arg17[%c0_80, %c0_81], %195 {strides = array<i32>} : memref<8x48xf32, #tpu.memory_space<vmem>>, vector<8x48xf32>,
    return
  }
  func.func @transform_0(%arg0: i32) -> (i32, i32) {
    %c0_i32 = arith.constant 0 : i32
    %c0_i32_0 = arith.constant 0 : i32
    return %arg0, %c0_i32 : i32, i32
  }
  func.func @transform_1(%arg0: i32) -> (i32, i32) {
    %c0_i32 = arith.constant 0 : i32
    %c0_i32_0 = arith.constant 0 : i32
    return %arg0, %c0_i32 : i32, i32
  }
  func.func @transform_2(%arg0: i32) -> (i32, i32) {
    %c0_i32 = arith.constant 0 : i32
    %c0_i32_0 = arith.constant 0 : i32
    %c0_i32_1 = arith.constant 0 : i32
    return %c0_i32, %c0_i32_0 : i32, i32
  }
  func.func @transform_3(%arg0: i32) -> (i32, i32) {
    %c0_i32 = arith.constant 0 : i32
    %c0_i32_0 = arith.constant 0 : i32
    %c0_i32_1 = arith.constant 0 : i32
    return %c0_i32, %c0_i32_0 : i32, i32
  }
  func.func @transform_4(%arg0: i32) -> (i32, i32) {
    %c0_i32 = arith.constant 0 : i32
    %c0_i32_0 = arith.constant 0 : i32
    %c0_i32_1 = arith.constant 0 : i32
    return %c0_i32, %c0_i32_0 : i32, i32
  }
  func.func @transform_5(%arg0: i32) -> (i32, i32) {
    %c0_i32 = arith.constant 0 : i32
    %c0_i32_0 = arith.constant 0 : i32
    %c0_i32_1 = arith.constant 0 : i32
    return %c0_i32, %c0_i32_0 : i32, i32
  }
  func.func @transform_6(%arg0: i32) -> (i32, i32) {
    %c0_i32 = arith.constant 0 : i32
    %c0_i32_0 = arith.constant 0 : i32
    %c0_i32_1 = arith.constant 0 : i32
    return %c0_i32, %c0_i32_0 : i32, i32
  }
  func.func @transform_7(%arg0: i32) -> (i32, i32) {
    %c0_i32 = arith.constant 0 : i32
    %c0_i32_0 = arith.constant 0 : i32
    %c0_i32_1 = arith.constant 0 : i32
    return %c0_i32, %c0_i32_0 : i32, i32
  }
  func.func @transform_8(%arg0: i32) -> (i32, i32) {
    %c0_i32 = arith.constant 0 : i32
    %c0_i32_0 = arith.constant 0 : i32
    %c0_i32_1 = arith.constant 0 : i32
    return %c0_i32, %c0_i32_0 : i32, i32
  }
  func.func @transform_9(%arg0: i32) -> (i32, i32) {
    %c0_i32 = arith.constant 0 : i32
    %c0_i32_0 = arith.constant 0 : i32
    %c0_i32_1 = arith.constant 0 : i32
    return %c0_i32, %c0_i32_0 : i32, i32
  }
  func.func @transform_10(%arg0: i32) -> (i32, i32) {
    %c0_i32 = arith.constant 0 : i32
    %c0_i32_0 = arith.constant 0 : i32
    %c0_i32_1 = arith.constant 0 : i32
    return %c0_i32, %c0_i32_0 : i32, i32
  }
  func.func @transform_11(%arg0: i32) -> (i32, i32) {
    %c0_i32 = arith.constant 0 : i32
    %c0_i32_0 = arith.constant 0 : i32
    %c0_i32_1 = arith.constant 0 : i32
    return %c0_i32, %c0_i32_0 : i32, i32
  }
  func.func @transform_12(%arg0: i32) -> (i32, i32) {
    %c0_i32 = arith.constant 0 : i32
    %c0_i32_0 = arith.constant 0 : i32
    %c0_i32_1 = arith.constant 0 : i32
    return %c0_i32, %c0_i32_0 : i32, i32
  }
  func.func @transform_13(%arg0: i32) -> (i32, i32) {
    %c0_i32 = arith.constant 0 : i32
    %c0_i32_0 = arith.constant 0 : i32
    %c0_i32_1 = arith.constant 0 : i32
    return %c0_i32, %c0_i32_0 : i32, i32
  }
  func.func @transform_14(%arg0: i32) -> (i32, i32) {
    %c0_i32 = arith.constant 0 : i32
    %c0_i32_0 = arith.constant 0 : i32
    %c0_i32_1 = arith.constant 0 : i32
    return %c0_i32, %c0_i32_0 : i32, i32
  }
  func.func @transform_15(%arg0: i32) -> (i32, i32) {
    %c0_i32 = arith.constant 0 : i32
    %c0_i32_0 = arith.constant 0 : i32
    %c0_i32_1 = arith.constant 0 : i32
    return %c0_i32, %c0_i32_0 : i32, i32
  }
  func.func @transform_16(%arg0: i32) -> (i32, i32) {
    %c0_i32 = arith.constant 0 : i32
    %c0_i32_0 = arith.constant 0 : i32
    return %arg0, %c0_i32 : i32, i32
  }
}

module attributes {stable_mosaic.version = 11 : i64} {
  func.func @kernel(%arg0: i32, %arg1: memref<8x48xf32, #tpu.memory_space<vmem>>, %arg2: memref<16x48xbf16, #tpu.memory_space<vmem>>, %arg3: memref<48x48xbf16, #tpu.memory_space<vmem>>, %arg4: memref<1x48xf32, #tpu.memory_space<vmem>>, %arg5: memref<48x96xbf16, #tpu.memory_space<vmem>>, %arg6: memref<1x96xf32, #tpu.memory_space<vmem>>, %arg7: memref<48x48xbf16, #tpu.memory_space<vmem>>, %arg8: memref<1x48xf32, #tpu.memory_space<vmem>>, %arg9: memref<1x48xf32, #tpu.memory_space<vmem>>, %arg10: memref<1x48xf32, #tpu.memory_space<vmem>>, %arg11: memref<48x192xbf16, #tpu.memory_space<vmem>>, %arg12: memref<1x192xf32, #tpu.memory_space<vmem>>, %arg13: memref<192x48xbf16, #tpu.memory_space<vmem>>, %arg14: memref<1x48xf32, #tpu.memory_space<vmem>>, %arg15: memref<1x48xf32, #tpu.memory_space<vmem>>, %arg16: memref<1x48xf32, #tpu.memory_space<vmem>>, %arg17: memref<8x48xf32, #tpu.memory_space<vmem>>, %arg18: memref<8x48xf32, #tpu.memory_space<vmem>>) attributes {dimension_semantics = [#tpu.dimension_semantics<parallel>], iteration_bounds = array<i64: 2>, scalar_prefetch = 0 : i64, scratch_operands = 1 : i64, tpu.core_type = #tpu.core_type<tc>, window_params = [{transform_indices = @transform_0, window_bounds = array<i64: 8, 48>}, {transform_indices = @transform_1, window_bounds = array<i64: 16, 48>}, {pipeline_mode = #tpu.pipeline_mode<synchronous>, transform_indices = @transform_2, window_bounds = array<i64: 48, 48>}, {pipeline_mode = #tpu.pipeline_mode<synchronous>, transform_indices = @transform_3, window_bounds = array<i64: 1, 48>}, {pipeline_mode = #tpu.pipeline_mode<synchronous>, transform_indices = @transform_4, window_bounds = array<i64: 48, 96>}, {pipeline_mode = #tpu.pipeline_mode<synchronous>, transform_indices = @transform_5, window_bounds = array<i64: 1, 96>}, {pipeline_mode = #tpu.pipeline_mode<synchronous>, transform_indices = @transform_6, window_bounds = array<i64: 48, 48>}, {pipeline_mode = #tpu.pipeline_mode<synchronous>, transform_indices = @transform_7, window_bounds = array<i64: 1, 48>}, {pipeline_mode = #tpu.pipeline_mode<synchronous>, transform_indices = @transform_8, window_bounds = array<i64: 1, 48>}, {pipeline_mode = #tpu.pipeline_mode<synchronous>, transform_indices = @transform_9, window_bounds = array<i64: 1, 48>}, {pipeline_mode = #tpu.pipeline_mode<synchronous>, transform_indices = @transform_10, window_bounds = array<i64: 48, 192>}, {pipeline_mode = #tpu.pipeline_mode<synchronous>, transform_indices = @transform_11, window_bounds = array<i64: 1, 192>}, {pipeline_mode = #tpu.pipeline_mode<synchronous>, transform_indices = @transform_12, window_bounds = array<i64: 192, 48>}, {pipeline_mode = #tpu.pipeline_mode<synchronous>, transform_indices = @transform_13, window_bounds = array<i64: 1, 48>}, {pipeline_mode = #tpu.pipeline_mode<synchronous>, transform_indices = @transform_14, window_bounds = array<i64: 1, 48>}, {pipeline_mode = #tpu.pipeline_mode<synchronous>, transform_indices = @transform_15, window_bounds = array<i64: 1, 48>}, {transform_indices = @transform_16, window_bounds = array<i64: 8, 48>}]} {
    %c0 = arith.constant 0 : index
    %c0_0 = arith.constant 0 : index
    %0 = vector.load %arg1[%c0, %c0_0] : memref<8x48xf32, #tpu.memory_space<vmem>>, vector<8x48xf32>
    %c0_1 = arith.constant 0 : index
    %c0_2 = arith.constant 0 : index
    %1 = vector.load %arg2[%c0_1, %c0_2] : memref<16x48xbf16, #tpu.memory_space<vmem>>, vector<16x48xbf16>
    %2 = arith.truncf %0 : vector<8x48xf32> to vector<8x48xbf16>
    %c0_3 = arith.constant 0 : index
    %c0_4 = arith.constant 0 : index
    %3 = vector.load %arg3[%c0_3, %c0_4] : memref<48x48xbf16, #tpu.memory_space<vmem>>, vector<48x48xbf16>
    %cst = arith.constant dense<0.000000e+00> : vector<8x48xf32>
    %4 = tpu.matmul %2, %3, %cst {dimension_numbers = #tpu.dot_dimension_numbers<[1], [0], [0], [1], [0, 0, 1, 1], [], []>} : vector<8x48xbf16>, vector<48x48xbf16>, vector<8x48xf32> -> vector<8x48xf32>
    %c0_5 = arith.constant 0 : index
    %c0_6 = arith.constant 0 : index
    %5 = vector.load %arg4[%c0_5, %c0_6] : memref<1x48xf32, #tpu.memory_space<vmem>>, vector<1x48xf32>
    %6 = vector.broadcast %5 : vector<1x48xf32> to vector<8x48xf32>
    %7 = arith.addf %4, %6 : vector<8x48xf32>
    %c0_7 = arith.constant 0 : index
    %c0_8 = arith.constant 0 : index
    %8 = vector.load %arg5[%c0_7, %c0_8] : memref<48x96xbf16, #tpu.memory_space<vmem>>, vector<48x96xbf16>
    %cst_9 = arith.constant dense<0.000000e+00> : vector<16x96xf32>
    %9 = tpu.matmul %1, %8, %cst_9 {dimension_numbers = #tpu.dot_dimension_numbers<[1], [0], [0], [1], [0, 0, 1, 1], [], []>} : vector<16x48xbf16>, vector<48x96xbf16>, vector<16x96xf32> -> vector<16x96xf32>
    %c0_10 = arith.constant 0 : index
    %c0_11 = arith.constant 0 : index
    %10 = vector.load %arg6[%c0_10, %c0_11] : memref<1x96xf32, #tpu.memory_space<vmem>>, vector<1x96xf32>
    %11 = vector.broadcast %10 : vector<1x96xf32> to vector<16x96xf32>
    %12 = arith.addf %9, %11 : vector<16x96xf32>
    %13 = arith.truncf %7 : vector<8x48xf32> to vector<8x48xbf16>
    %14 = arith.truncf %12 : vector<16x96xf32> to vector<16x96xbf16>
    %15 = vector.extract_strided_slice %13 {offsets = [0, 0], sizes = [8, 8], strides = [1, 1]} : vector<8x48xbf16> to vector<8x8xbf16>
    %16 = vector.extract_strided_slice %14 {offsets = [0, 0], sizes = [16, 8], strides = [1, 1]} : vector<16x96xbf16> to vector<16x8xbf16>
    %17 = vector.extract_strided_slice %14 {offsets = [0, 48], sizes = [16, 8], strides = [1, 1]} : vector<16x96xbf16> to vector<16x8xbf16>
    %cst_12 = arith.constant dense<0.000000e+00> : vector<8x16xf32>
    %18 = tpu.matmul %15, %16, %cst_12 {dimension_numbers = #tpu.dot_dimension_numbers<[1], [1], [0], [0], [0, 0, 1, 0], [], []>} : vector<8x8xbf16>, vector<16x8xbf16>, vector<8x16xf32> -> vector<8x16xf32>
    %cst_13 = arith.constant 0.353553385 : f32
    %19 = vector.broadcast %cst_13 : f32 to vector<8x16xf32>
    %20 = arith.mulf %18, %19 : vector<8x16xf32>
    %cst_14 = arith.constant dense<0xFF800000> : vector<8xf32>
    %21 = vector.multi_reduction <maximumf>, %20, %cst_14 [1] : vector<8x16xf32> to vector<8xf32>
    %22 = vector.shape_cast %21 : vector<8xf32> to vector<8x1xf32>
    %23 = vector.broadcast %22 : vector<8x1xf32> to vector<8x16xf32>
    %24 = arith.subf %20, %23 : vector<8x16xf32>
    %25 = math.exp %24 : vector<8x16xf32>
    %cst_15 = arith.constant dense<0.000000e+00> : vector<8xf32>
    %26 = vector.multi_reduction <add>, %25, %cst_15 [1] : vector<8x16xf32> to vector<8xf32>
    %27 = vector.shape_cast %26 : vector<8xf32> to vector<8x1xf32>
    %28 = tpu.reciprocal %27 {approx = true} : vector<8x1xf32> -> vector<8x1xf32>
    %29 = vector.broadcast %28 : vector<8x1xf32> to vector<8x16xf32>
    %30 = arith.mulf %25, %29 : vector<8x16xf32>
    %31 = arith.truncf %30 : vector<8x16xf32> to vector<8x16xbf16>
    %cst_16 = arith.constant dense<0.000000e+00> : vector<8x8xf32>
    %32 = tpu.matmul %31, %17, %cst_16 {dimension_numbers = #tpu.dot_dimension_numbers<[1], [0], [0], [1], [0, 0, 1, 1], [], []>} : vector<8x16xbf16>, vector<16x8xbf16>, vector<8x8xf32> -> vector<8x8xf32>
    %33 = vector.extract_strided_slice %13 {offsets = [0, 8], sizes = [8, 8], strides = [1, 1]} : vector<8x48xbf16> to vector<8x8xbf16>
    %34 = vector.extract_strided_slice %14 {offsets = [0, 8], sizes = [16, 8], strides = [1, 1]} : vector<16x96xbf16> to vector<16x8xbf16>
    %35 = vector.extract_strided_slice %14 {offsets = [0, 56], sizes = [16, 8], strides = [1, 1]} : vector<16x96xbf16> to vector<16x8xbf16>
    %cst_17 = arith.constant dense<0.000000e+00> : vector<8x16xf32>
    %36 = tpu.matmul %33, %34, %cst_17 {dimension_numbers = #tpu.dot_dimension_numbers<[1], [1], [0], [0], [0, 0, 1, 0], [], []>} : vector<8x8xbf16>, vector<16x8xbf16>, vector<8x16xf32> -> vector<8x16xf32>
    %cst_18 = arith.constant 0.353553385 : f32
    %37 = vector.broadcast %cst_18 : f32 to vector<8x16xf32>
    %38 = arith.mulf %36, %37 : vector<8x16xf32>
    %cst_19 = arith.constant dense<0xFF800000> : vector<8xf32>
    %39 = vector.multi_reduction <maximumf>, %38, %cst_19 [1] : vector<8x16xf32> to vector<8xf32>
    %40 = vector.shape_cast %39 : vector<8xf32> to vector<8x1xf32>
    %41 = vector.broadcast %40 : vector<8x1xf32> to vector<8x16xf32>
    %42 = arith.subf %38, %41 : vector<8x16xf32>
    %43 = math.exp %42 : vector<8x16xf32>
    %cst_20 = arith.constant dense<0.000000e+00> : vector<8xf32>
    %44 = vector.multi_reduction <add>, %43, %cst_20 [1] : vector<8x16xf32> to vector<8xf32>
    %45 = vector.shape_cast %44 : vector<8xf32> to vector<8x1xf32>
    %46 = tpu.reciprocal %45 {approx = true} : vector<8x1xf32> -> vector<8x1xf32>
    %47 = vector.broadcast %46 : vector<8x1xf32> to vector<8x16xf32>
    %48 = arith.mulf %43, %47 : vector<8x16xf32>
    %49 = arith.truncf %48 : vector<8x16xf32> to vector<8x16xbf16>
    %cst_21 = arith.constant dense<0.000000e+00> : vector<8x8xf32>
    %50 = tpu.matmul %49, %35, %cst_21 {dimension_numbers = #tpu.dot_dimension_numbers<[1], [0], [0], [1], [0, 0, 1, 1], [], []>} : vector<8x16xbf16>, vector<16x8xbf16>, vector<8x8xf32> -> vector<8x8xf32>
    %51 = vector.extract_strided_slice %13 {offsets = [0, 16], sizes = [8, 8], strides = [1, 1]} : vector<8x48xbf16> to vector<8x8xbf16>
    %52 = vector.extract_strided_slice %14 {offsets = [0, 16], sizes = [16, 8], strides = [1, 1]} : vector<16x96xbf16> to vector<16x8xbf16>
    %53 = vector.extract_strided_slice %14 {offsets = [0, 64], sizes = [16, 8], strides = [1, 1]} : vector<16x96xbf16> to vector<16x8xbf16>
    %cst_22 = arith.constant dense<0.000000e+00> : vector<8x16xf32>
    %54 = tpu.matmul %51, %52, %cst_22 {dimension_numbers = #tpu.dot_dimension_numbers<[1], [1], [0], [0], [0, 0, 1, 0], [], []>} : vector<8x8xbf16>, vector<16x8xbf16>, vector<8x16xf32> -> vector<8x16xf32>
    %cst_23 = arith.constant 0.353553385 : f32
    %55 = vector.broadcast %cst_23 : f32 to vector<8x16xf32>
    %56 = arith.mulf %54, %55 : vector<8x16xf32>
    %cst_24 = arith.constant dense<0xFF800000> : vector<8xf32>
    %57 = vector.multi_reduction <maximumf>, %56, %cst_24 [1] : vector<8x16xf32> to vector<8xf32>
    %58 = vector.shape_cast %57 : vector<8xf32> to vector<8x1xf32>
    %59 = vector.broadcast %58 : vector<8x1xf32> to vector<8x16xf32>
    %60 = arith.subf %56, %59 : vector<8x16xf32>
    %61 = math.exp %60 : vector<8x16xf32>
    %cst_25 = arith.constant dense<0.000000e+00> : vector<8xf32>
    %62 = vector.multi_reduction <add>, %61, %cst_25 [1] : vector<8x16xf32> to vector<8xf32>
    %63 = vector.shape_cast %62 : vector<8xf32> to vector<8x1xf32>
    %64 = tpu.reciprocal %63 {approx = true} : vector<8x1xf32> -> vector<8x1xf32>
    %65 = vector.broadcast %64 : vector<8x1xf32> to vector<8x16xf32>
    %66 = arith.mulf %61, %65 : vector<8x16xf32>
    %67 = arith.truncf %66 : vector<8x16xf32> to vector<8x16xbf16>
    %cst_26 = arith.constant dense<0.000000e+00> : vector<8x8xf32>
    %68 = tpu.matmul %67, %53, %cst_26 {dimension_numbers = #tpu.dot_dimension_numbers<[1], [0], [0], [1], [0, 0, 1, 1], [], []>} : vector<8x16xbf16>, vector<16x8xbf16>, vector<8x8xf32> -> vector<8x8xf32>
    %69 = vector.extract_strided_slice %13 {offsets = [0, 24], sizes = [8, 8], strides = [1, 1]} : vector<8x48xbf16> to vector<8x8xbf16>
    %70 = vector.extract_strided_slice %14 {offsets = [0, 24], sizes = [16, 8], strides = [1, 1]} : vector<16x96xbf16> to vector<16x8xbf16>
    %71 = vector.extract_strided_slice %14 {offsets = [0, 72], sizes = [16, 8], strides = [1, 1]} : vector<16x96xbf16> to vector<16x8xbf16>
    %cst_27 = arith.constant dense<0.000000e+00> : vector<8x16xf32>
    %72 = tpu.matmul %69, %70, %cst_27 {dimension_numbers = #tpu.dot_dimension_numbers<[1], [1], [0], [0], [0, 0, 1, 0], [], []>} : vector<8x8xbf16>, vector<16x8xbf16>, vector<8x16xf32> -> vector<8x16xf32>
    %cst_28 = arith.constant 0.353553385 : f32
    %73 = vector.broadcast %cst_28 : f32 to vector<8x16xf32>
    %74 = arith.mulf %72, %73 : vector<8x16xf32>
    %cst_29 = arith.constant dense<0xFF800000> : vector<8xf32>
    %75 = vector.multi_reduction <maximumf>, %74, %cst_29 [1] : vector<8x16xf32> to vector<8xf32>
    %76 = vector.shape_cast %75 : vector<8xf32> to vector<8x1xf32>
    %77 = vector.broadcast %76 : vector<8x1xf32> to vector<8x16xf32>
    %78 = arith.subf %74, %77 : vector<8x16xf32>
    %79 = math.exp %78 : vector<8x16xf32>
    %cst_30 = arith.constant dense<0.000000e+00> : vector<8xf32>
    %80 = vector.multi_reduction <add>, %79, %cst_30 [1] : vector<8x16xf32> to vector<8xf32>
    %81 = vector.shape_cast %80 : vector<8xf32> to vector<8x1xf32>
    %82 = tpu.reciprocal %81 {approx = true} : vector<8x1xf32> -> vector<8x1xf32>
    %83 = vector.broadcast %82 : vector<8x1xf32> to vector<8x16xf32>
    %84 = arith.mulf %79, %83 : vector<8x16xf32>
    %85 = arith.truncf %84 : vector<8x16xf32> to vector<8x16xbf16>
    %cst_31 = arith.constant dense<0.000000e+00> : vector<8x8xf32>
    %86 = tpu.matmul %85, %71, %cst_31 {dimension_numbers = #tpu.dot_dimension_numbers<[1], [0], [0], [1], [0, 0, 1, 1], [], []>} : vector<8x16xbf16>, vector<16x8xbf16>, vector<8x8xf32> -> vector<8x8xf32>
    %87 = vector.extract_strided_slice %13 {offsets = [0, 32], sizes = [8, 8], strides = [1, 1]} : vector<8x48xbf16> to vector<8x8xbf16>
    %88 = vector.extract_strided_slice %14 {offsets = [0, 32], sizes = [16, 8], strides = [1, 1]} : vector<16x96xbf16> to vector<16x8xbf16>
    %89 = vector.extract_strided_slice %14 {offsets = [0, 80], sizes = [16, 8], strides = [1, 1]} : vector<16x96xbf16> to vector<16x8xbf16>
    %cst_32 = arith.constant dense<0.000000e+00> : vector<8x16xf32>
    %90 = tpu.matmul %87, %88, %cst_32 {dimension_numbers = #tpu.dot_dimension_numbers<[1], [1], [0], [0], [0, 0, 1, 0], [], []>} : vector<8x8xbf16>, vector<16x8xbf16>, vector<8x16xf32> -> vector<8x16xf32>
    %cst_33 = arith.constant 0.353553385 : f32
    %91 = vector.broadcast %cst_33 : f32 to vector<8x16xf32>
    %92 = arith.mulf %90, %91 : vector<8x16xf32>
    %cst_34 = arith.constant dense<0xFF800000> : vector<8xf32>
    %93 = vector.multi_reduction <maximumf>, %92, %cst_34 [1] : vector<8x16xf32> to vector<8xf32>
    %94 = vector.shape_cast %93 : vector<8xf32> to vector<8x1xf32>
    %95 = vector.broadcast %94 : vector<8x1xf32> to vector<8x16xf32>
    %96 = arith.subf %92, %95 : vector<8x16xf32>
    %97 = math.exp %96 : vector<8x16xf32>
    %cst_35 = arith.constant dense<0.000000e+00> : vector<8xf32>
    %98 = vector.multi_reduction <add>, %97, %cst_35 [1] : vector<8x16xf32> to vector<8xf32>
    %99 = vector.shape_cast %98 : vector<8xf32> to vector<8x1xf32>
    %100 = tpu.reciprocal %99 {approx = true} : vector<8x1xf32> -> vector<8x1xf32>
    %101 = vector.broadcast %100 : vector<8x1xf32> to vector<8x16xf32>
    %102 = arith.mulf %97, %101 : vector<8x16xf32>
    %103 = arith.truncf %102 : vector<8x16xf32> to vector<8x16xbf16>
    %cst_36 = arith.constant dense<0.000000e+00> : vector<8x8xf32>
    %104 = tpu.matmul %103, %89, %cst_36 {dimension_numbers = #tpu.dot_dimension_numbers<[1], [0], [0], [1], [0, 0, 1, 1], [], []>} : vector<8x16xbf16>, vector<16x8xbf16>, vector<8x8xf32> -> vector<8x8xf32>
    %105 = vector.extract_strided_slice %13 {offsets = [0, 40], sizes = [8, 8], strides = [1, 1]} : vector<8x48xbf16> to vector<8x8xbf16>
    %106 = vector.extract_strided_slice %14 {offsets = [0, 40], sizes = [16, 8], strides = [1, 1]} : vector<16x96xbf16> to vector<16x8xbf16>
    %107 = vector.extract_strided_slice %14 {offsets = [0, 88], sizes = [16, 8], strides = [1, 1]} : vector<16x96xbf16> to vector<16x8xbf16>
    %cst_37 = arith.constant dense<0.000000e+00> : vector<8x16xf32>
    %108 = tpu.matmul %105, %106, %cst_37 {dimension_numbers = #tpu.dot_dimension_numbers<[1], [1], [0], [0], [0, 0, 1, 0], [], []>} : vector<8x8xbf16>, vector<16x8xbf16>, vector<8x16xf32> -> vector<8x16xf32>
    %cst_38 = arith.constant 0.353553385 : f32
    %109 = vector.broadcast %cst_38 : f32 to vector<8x16xf32>
    %110 = arith.mulf %108, %109 : vector<8x16xf32>
    %cst_39 = arith.constant dense<0xFF800000> : vector<8xf32>
    %111 = vector.multi_reduction <maximumf>, %110, %cst_39 [1] : vector<8x16xf32> to vector<8xf32>
    %112 = vector.shape_cast %111 : vector<8xf32> to vector<8x1xf32>
    %113 = vector.broadcast %112 : vector<8x1xf32> to vector<8x16xf32>
    %114 = arith.subf %110, %113 : vector<8x16xf32>
    %115 = math.exp %114 : vector<8x16xf32>
    %cst_40 = arith.constant dense<0.000000e+00> : vector<8xf32>
    %116 = vector.multi_reduction <add>, %115, %cst_40 [1] : vector<8x16xf32> to vector<8xf32>
    %117 = vector.shape_cast %116 : vector<8xf32> to vector<8x1xf32>
    %118 = tpu.reciprocal %117 {approx = true} : vector<8x1xf32> -> vector<8x1xf32>
    %119 = vector.broadcast %118 : vector<8x1xf32> to vector<8x16xf32>
    %120 = arith.mulf %115, %119 : vector<8x16xf32>
    %121 = arith.truncf %120 : vector<8x16xf32> to vector<8x16xbf16>
    %cst_41 = arith.constant dense<0.000000e+00> : vector<8x8xf32>
    %122 = tpu.matmul %121, %107, %cst_41 {dimension_numbers = #tpu.dot_dimension_numbers<[1], [0], [0], [1], [0, 0, 1, 1], [], []>} : vector<8x16xbf16>, vector<16x8xbf16>, vector<8x8xf32> -> vector<8x8xf32>
    %123 = tpu.concatenate %32, %50, %68, %86, %104, %122 in 1 : vector<8x8xf32>, vector<8x8xf32>, vector<8x8xf32>, vector<8x8xf32>, vector<8x8xf32>, vector<8x8xf32> -> vector<8x48xf32>
    %c0_42 = arith.constant 0 : index
    %c0_43 = arith.constant 0 : index
    %124 = vector.load %arg18[%c0_42, %c0_43] : memref<8x48xf32, #tpu.memory_space<vmem>>, vector<8x48xf32>
    tpu.vector_store %arg18[%c0_42, %c0_43], %123 {strides = array<i32>} : memref<8x48xf32, #tpu.memory_space<vmem>>, vector<8x48xf32>,
    %c0_44 = arith.constant 0 : index
    %c0_45 = arith.constant 0 : index
    %125 = vector.load %arg18[%c0_44, %c0_45] : memref<8x48xf32, #tpu.memory_space<vmem>>, vector<8x48xf32>
    %126 = arith.truncf %125 : vector<8x48xf32> to vector<8x48xbf16>
    %c0_46 = arith.constant 0 : index
    %c0_47 = arith.constant 0 : index
    %127 = vector.load %arg7[%c0_46, %c0_47] : memref<48x48xbf16, #tpu.memory_space<vmem>>, vector<48x48xbf16>
    %cst_48 = arith.constant dense<0.000000e+00> : vector<8x48xf32>
    %128 = tpu.matmul %126, %127, %cst_48 {dimension_numbers = #tpu.dot_dimension_numbers<[1], [0], [0], [1], [0, 0, 1, 1], [], []>} : vector<8x48xbf16>, vector<48x48xbf16>, vector<8x48xf32> -> vector<8x48xf32>
    %c0_49 = arith.constant 0 : index
    %c0_50 = arith.constant 0 : index
    %129 = vector.load %arg8[%c0_49, %c0_50] : memref<1x48xf32, #tpu.memory_space<vmem>>, vector<1x48xf32>
    %130 = vector.broadcast %129 : vector<1x48xf32> to vector<8x48xf32>
    %131 = arith.addf %128, %130 : vector<8x48xf32>
    %132 = arith.addf %0, %131 : vector<8x48xf32>
    %cst_51 = arith.constant dense<0.000000e+00> : vector<8xf32>
    %133 = vector.multi_reduction <add>, %132, %cst_51 [1] : vector<8x48xf32> to vector<8xf32>
    %134 = vector.shape_cast %133 : vector<8xf32> to vector<8x1xf32>
    %cst_52 = arith.constant 4.800000e+01 : f32
    %135 = vector.broadcast %cst_52 : f32 to vector<8x1xf32>
    %136 = arith.divf %134, %135 : vector<8x1xf32>
    %137 = vector.broadcast %136 : vector<8x1xf32> to vector<8x48xf32>
    %138 = arith.subf %132, %137 : vector<8x48xf32>
    %139 = arith.mulf %138, %138 : vector<8x48xf32>
    %cst_53 = arith.constant dense<0.000000e+00> : vector<8xf32>
    %140 = vector.multi_reduction <add>, %139, %cst_53 [1] : vector<8x48xf32> to vector<8xf32>
    %141 = vector.shape_cast %140 : vector<8xf32> to vector<8x1xf32>
    %cst_54 = arith.constant 4.800000e+01 : f32
    %142 = vector.broadcast %cst_54 : f32 to vector<8x1xf32>
    %143 = arith.divf %141, %142 : vector<8x1xf32>
    %144 = vector.broadcast %136 : vector<8x1xf32> to vector<8x48xf32>
    %145 = arith.subf %132, %144 : vector<8x48xf32>
    %cst_55 = arith.constant 9.99999974E-6 : f32
    %146 = vector.broadcast %cst_55 : f32 to vector<8x1xf32>
    %147 = arith.addf %143, %146 : vector<8x1xf32>
    %148 = math.rsqrt %147 : vector<8x1xf32>
    %149 = vector.broadcast %148 : vector<8x1xf32> to vector<8x48xf32>
    %150 = arith.mulf %145, %149 : vector<8x48xf32>
    %c0_56 = arith.constant 0 : index
    %c0_57 = arith.constant 0 : index
    %151 = vector.load %arg9[%c0_56, %c0_57] : memref<1x48xf32, #tpu.memory_space<vmem>>, vector<1x48xf32>
    %152 = vector.broadcast %151 : vector<1x48xf32> to vector<8x48xf32>
    %153 = arith.mulf %150, %152 : vector<8x48xf32>
    %c0_58 = arith.constant 0 : index
    %c0_59 = arith.constant 0 : index
    %154 = vector.load %arg10[%c0_58, %c0_59] : memref<1x48xf32, #tpu.memory_space<vmem>>, vector<1x48xf32>
    %155 = vector.broadcast %154 : vector<1x48xf32> to vector<8x48xf32>
    %156 = arith.addf %153, %155 : vector<8x48xf32>
    %157 = arith.truncf %156 : vector<8x48xf32> to vector<8x48xbf16>
    %c0_60 = arith.constant 0 : index
    %c0_61 = arith.constant 0 : index
    %158 = vector.load %arg12[%c0_60, %c0_61] : memref<1x192xf32, #tpu.memory_space<vmem>>, vector<1x192xf32>
    %c0_62 = arith.constant 0 : index
    %c0_63 = arith.constant 0 : index
    %159 = vector.load %arg11[%c0_62, %c0_63] : memref<48x192xbf16, #tpu.memory_space<vmem>>, vector<48x192xbf16>
    %cst_64 = arith.constant dense<0.000000e+00> : vector<8x192xf32>
    %160 = tpu.matmul %157, %159, %cst_64 {dimension_numbers = #tpu.dot_dimension_numbers<[1], [0], [0], [1], [0, 0, 1, 1], [], []>} : vector<8x48xbf16>, vector<48x192xbf16>, vector<8x192xf32> -> vector<8x192xf32>
    %161 = vector.broadcast %158 : vector<1x192xf32> to vector<8x192xf32>
    %162 = arith.addf %160, %161 : vector<8x192xf32>
    %cst_65 = arith.constant 0.000000e+00 : f32
    %163 = vector.broadcast %cst_65 : f32 to vector<8x192xf32>
    %164 = arith.maximumf %162, %163 : vector<8x192xf32>
    %165 = arith.truncf %164 : vector<8x192xf32> to vector<8x192xbf16>
    %c0_66 = arith.constant 0 : index
    %c0_67 = arith.constant 0 : index
    %166 = vector.load %arg13[%c0_66, %c0_67] : memref<192x48xbf16, #tpu.memory_space<vmem>>, vector<192x48xbf16>
    %cst_68 = arith.constant dense<0.000000e+00> : vector<8x48xf32>
    %167 = tpu.matmul %165, %166, %cst_68 {dimension_numbers = #tpu.dot_dimension_numbers<[1], [0], [0], [1], [0, 0, 1, 1], [], []>} : vector<8x192xbf16>, vector<192x48xbf16>, vector<8x48xf32> -> vector<8x48xf32>
    %c0_69 = arith.constant 0 : index
    %c0_70 = arith.constant 0 : index
    %168 = vector.load %arg14[%c0_69, %c0_70] : memref<1x48xf32, #tpu.memory_space<vmem>>, vector<1x48xf32>
    %169 = vector.broadcast %168 : vector<1x48xf32> to vector<8x48xf32>
    %170 = arith.addf %167, %169 : vector<8x48xf32>
    %171 = arith.addf %156, %170 : vector<8x48xf32>
    %cst_71 = arith.constant dense<0.000000e+00> : vector<8xf32>
    %172 = vector.multi_reduction <add>, %171, %cst_71 [1] : vector<8x48xf32> to vector<8xf32>
    %173 = vector.shape_cast %172 : vector<8xf32> to vector<8x1xf32>
    %cst_72 = arith.constant 4.800000e+01 : f32
    %174 = vector.broadcast %cst_72 : f32 to vector<8x1xf32>
    %175 = arith.divf %173, %174 : vector<8x1xf32>
    %176 = vector.broadcast %175 : vector<8x1xf32> to vector<8x48xf32>
    %177 = arith.subf %171, %176 : vector<8x48xf32>
    %178 = arith.mulf %177, %177 : vector<8x48xf32>
    %cst_73 = arith.constant dense<0.000000e+00> : vector<8xf32>
    %179 = vector.multi_reduction <add>, %178, %cst_73 [1] : vector<8x48xf32> to vector<8xf32>
    %180 = vector.shape_cast %179 : vector<8xf32> to vector<8x1xf32>
    %cst_74 = arith.constant 4.800000e+01 : f32
    %181 = vector.broadcast %cst_74 : f32 to vector<8x1xf32>
    %182 = arith.divf %180, %181 : vector<8x1xf32>
    %183 = vector.broadcast %175 : vector<8x1xf32> to vector<8x48xf32>
    %184 = arith.subf %171, %183 : vector<8x48xf32>
    %cst_75 = arith.constant 9.99999974E-6 : f32
    %185 = vector.broadcast %cst_75 : f32 to vector<8x1xf32>
    %186 = arith.addf %182, %185 : vector<8x1xf32>
    %187 = math.rsqrt %186 : vector<8x1xf32>
    %188 = vector.broadcast %187 : vector<8x1xf32> to vector<8x48xf32>
    %189 = arith.mulf %184, %188 : vector<8x48xf32>
    %c0_76 = arith.constant 0 : index
    %c0_77 = arith.constant 0 : index
    %190 = vector.load %arg15[%c0_76, %c0_77] : memref<1x48xf32, #tpu.memory_space<vmem>>, vector<1x48xf32>
    %191 = vector.broadcast %190 : vector<1x48xf32> to vector<8x48xf32>
    %192 = arith.mulf %189, %191 : vector<8x48xf32>
    %c0_78 = arith.constant 0 : index
    %c0_79 = arith.constant 0 : index
    %193 = vector.load %arg16[%c0_78, %c0_79] : memref<1x48xf32, #tpu.memory_space<vmem>>, vector<1x48xf32>
    %194 = vector.broadcast %193 : vector<1x48xf32> to vector<8x48xf32>
    %195 = arith.addf %192, %194 : vector<8x48xf32>
    %c0_80 = arith.constant 0 : index
    %c0_81 = arith.constant 0 : index
    %196 = vector.load %arg17[%c0_80, %c0_81] : memref<8x48xf32, #tpu.memory_space<vmem>>, vector<8x48xf32>
    tpu.vector_store %arg17[%c0_80, %c0_81], %195 {strides = array<i32>} : memref<8x48xf32, #tpu.memory_space<vmem>>, vector<8x48xf32>,
    return
  }
  func.func @transform_0(%arg0: i32) -> (i32, i32) {
    %c0_i32 = arith.constant 0 : i32
    %c0_i32_0 = arith.constant 0 : i32
    return %arg0, %c0_i32 : i32, i32
  }
  func.func @transform_1(%arg0: i32) -> (i32, i32) {
    %c0_i32 = arith.constant 0 : i32
    %c0_i32_0 = arith.constant 0 : i32
    return %arg0, %c0_i32 : i32, i32
  }
  func.func @transform_2(%arg0: i32) -> (i32, i32) {
    %c0_i32 = arith.constant 0 : i32
    %c0_i32_0 = arith.constant 0 : i32
    %c0_i32_1 = arith.constant 0 : i32
    return %c0_i32, %c0_i32_0 : i32, i32
  }
  func.func @transform_3(%arg0: i32) -> (i32, i32) {
    %c0_i32 = arith.constant 0 : i32
    %c0_i32_0 = arith.constant 0 : i32
    %c0_i32_1 = arith.constant 0 : i32
    return %c0_i32, %c0_i32_0 : i32, i32
  }
  func.func @transform_4(%arg0: i32) -> (i32, i32) {
    %c0_i32 = arith.constant 0 : i32
    %c0_i32_0 = arith.constant 0 : i32
    %c0_i32_1 = arith.constant 0 : i32
    return %c0_i32, %c0_i32_0 : i32, i32
  }
  func.func @transform_5(%arg0: i32) -> (i32, i32) {
    %c0_i32 = arith.constant 0 : i32
    %c0_i32_0 = arith.constant 0 : i32
    %c0_i32_1 = arith.constant 0 : i32
    return %c0_i32, %c0_i32_0 : i32, i32
  }
  func.func @transform_6(%arg0: i32) -> (i32, i32) {
    %c0_i32 = arith.constant 0 : i32
    %c0_i32_0 = arith.constant 0 : i32
    %c0_i32_1 = arith.constant 0 : i32
    return %c0_i32, %c0_i32_0 : i32, i32
  }
  func.func @transform_7(%arg0: i32) -> (i32, i32) {
    %c0_i32 = arith.constant 0 : i32
    %c0_i32_0 = arith.constant 0 : i32
    %c0_i32_1 = arith.constant 0 : i32
    return %c0_i32, %c0_i32_0 : i32, i32
  }
  func.func @transform_8(%arg0: i32) -> (i32, i32) {
    %c0_i32 = arith.constant 0 : i32
    %c0_i32_0 = arith.constant 0 : i32
    %c0_i32_1 = arith.constant 0 : i32
    return %c0_i32, %c0_i32_0 : i32, i32
  }
  func.func @transform_9(%arg0: i32) -> (i32, i32) {
    %c0_i32 = arith.constant 0 : i32
    %c0_i32_0 = arith.constant 0 : i32
    %c0_i32_1 = arith.constant 0 : i32
    return %c0_i32, %c0_i32_0 : i32, i32
  }
  func.func @transform_10(%arg0: i32) -> (i32, i32) {
    %c0_i32 = arith.constant 0 : i32
    %c0_i32_0 = arith.constant 0 : i32
    %c0_i32_1 = arith.constant 0 : i32
    return %c0_i32, %c0_i32_0 : i32, i32
  }
  func.func @transform_11(%arg0: i32) -> (i32, i32) {
    %c0_i32 = arith.constant 0 : i32
    %c0_i32_0 = arith.constant 0 : i32
    %c0_i32_1 = arith.constant 0 : i32
    return %c0_i32, %c0_i32_0 : i32, i32
  }
  func.func @transform_12(%arg0: i32) -> (i32, i32) {
    %c0_i32 = arith.constant 0 : i32
    %c0_i32_0 = arith.constant 0 : i32
    %c0_i32_1 = arith.constant 0 : i32
    return %c0_i32, %c0_i32_0 : i32, i32
  }
  func.func @transform_13(%arg0: i32) -> (i32, i32) {
    %c0_i32 = arith.constant 0 : i32
    %c0_i32_0 = arith.constant 0 : i32
    %c0_i32_1 = arith.constant 0 : i32
    return %c0_i32, %c0_i32_0 : i32, i32
  }
  func.func @transform_14(%arg0: i32) -> (i32, i32) {
    %c0_i32 = arith.constant 0 : i32
    %c0_i32_0 = arith.constant 0 : i32
    %c0_i32_1 = arith.constant 0 : i32
    return %c0_i32, %c0_i32_0 : i32, i32
  }
  func.func @transform_15(%arg0: i32) -> (i32, i32) {
    %c0_i32 = arith.constant 0 : i32
    %c0_i32_0 = arith.constant 0 : i32
    %c0_i32_1 = arith.constant 0 : i32
    return %c0_i32, %c0_i32_0 : i32, i32
  }
  func.func @transform_16(%arg0: i32) -> (i32, i32) {
    %c0_i32 = arith.constant 0 : i32
    %c0_i32_0 = arith.constant 0 : i32
    return %arg0, %c0_i32 : i32, i32
  }
}

</mosaic_0001>

<bundles_post_ra>
// kernel: tpu_custom_call.1
= control target key start
LH: loop header
LB: loop body
LE: loop exit
PB: predicated region body
PF: predicated region fallthrough
CT: control target
= control target key end

     0   :  { %s2276_s0 = inlined_call_operand.vmem [shape: f32[16,48], index: 0, kind: input, shape index: {}]   ;;  %s2277_s1 = inlined_call_operand.hbm [shape: bf16[32,48], index: 1, kind: input, shape index: {}]   ;;  %s2278_s2 = inlined_call_operand.vmem [shape: bf16[48,48], index: 2, kind: input, shape index: {}]   ;;  %s2279_s3 = inlined_call_operand.vmem [shape: f32[1,48], index: 3, kind: input, shape index: {}]   ;;  %s2280_s4 = inlined_call_operand.vmem [shape: bf16[48,96], index: 4, kind: input, shape index: {}]   ;;  %s2281_s5 = inlined_call_operand.vmem [shape: f32[1,96], index: 5, kind: input, shape index: {}]   ;;  %s2282_s6 = inlined_call_operand.vmem [shape: bf16[48,48], index: 6, kind: input, shape index: {}]   ;;  %s2283_s7 = inlined_call_operand.vmem [shape: f32[1,48], index: 7, kind: input, shape index: {}]   ;;  %s2284_s8 = inlined_call_operand.vmem [shape: f32[1,48], index: 8, kind: input, shape index: {}]   ;;  %s2285_s9 = inlined_call_operand.vmem [shape: f32[1,48], index: 9, kind: input, shape index: {}]   ;;  %s2286_s10 = inlined_call_operand.vmem [shape: bf16[48,192], index: 10, kind: input, shape index: {}]   ;;  %s2287_s11 = inlined_call_operand.vmem [shape: f32[1,192], index: 11, kind: input, shape index: {}]   ;;  %s2288_s12 = inlined_call_operand.vmem [shape: bf16[192,48], index: 12, kind: input, shape index: {}]   ;;  %s2289_s13 = inlined_call_operand.vmem [shape: f32[1,48], index: 13, kind: input, shape index: {}]   ;;  %s2290_s14 = inlined_call_operand.vmem [shape: f32[1,48], index: 14, kind: input, shape index: {}]   ;;  %s2291_s15 = inlined_call_operand.vmem [shape: f32[1,48], index: 15, kind: input, shape index: {}]   ;;  %s2292_s16 = inlined_call_operand.hbm [shape: f32[16,48], index: 16, kind: output, shape index: {}]  }
   0x1   :  { %2302 = sst [smem:[#allocation15_spill]] %s2276_s0 }
   0x2   :  { %2303 = sst [smem:[#allocation16_spill]] %s2277_s1 }
   0x3   :  { %2304 = sst [smem:[#allocation17_spill]] %s2290_s14 }
   0x4   :  { %2305 = sst [smem:[#allocation18_spill]] %s2291_s15 }
   0x5   :  { %2306 = sst [smem:[#allocation19_spill]] %s2292_s16 }
   0x6   :  { %21 = vsyncpa [#allocation4], 0 }
   0x7   :  { %23 = vsyncpa [#allocation4 + $0x1], 0 }
   0x8   :  { %24 = vsyncpa [#allocation5], 0 }
   0x9   :  { %26 = vsyncpa [#allocation5 + $0x1], 0  ;;  %s1928_s21 = smov 0   ;;  %s1930_s22 = smov 0  }
   0xa   :  { %s1932_s23 = smov 0   ;;  %s1934_s24 = smov 0  }
   0xb LB: > { %2307 = sst [smem:[#allocation9_spill]] %s1811_s21  ;;  %s1949_s25 = sadd.s32 4294967295, %s1823_s24   ;;  %s1823_s24 = sphi %s1934_s24, %s2328_s24   ;;  %s1819_s23 = sphi %s1932_s23, %s2333_s23   ;;  %s1815_s22 = sphi %s1930_s22, %s2332_s22   ;;  %s1811_s21 = sphi %s1928_s21, %s2331_s21  }
   0xc   : > { %2308 = sst [smem:[#allocation10_spill]] %s1819_s23  ;;  %s1452_s26 = sadd.s32 4294967294, %s1823_s24  }
   0xd   : > { %s1953_s27 = sadd.s32 1, %s1823_s24   ;;  %s65_s28 = sadd.s32 1, %s1819_s23 }
   0xe   : > { %2309 = sst [smem:[#allocation11_spill]] %s1953_s27  ;;  %s62_s29 = ssub.s32 %s1823_s24, %s1953_s27 }
   0xf   : > { %p72_p0 = scmp.ne.s32.totalorder %s1819_s23, %s1815_s22  ;;  %p63_p1 = scmp.eq.s32.totalorder %s62_s29, 0 }
  0x10   : > { %p73_p2 = scmp.eq.s32.totalorder %s1823_s24, 0  ;;  %p78_p3 = scmp.ne.s32.totalorder %s1815_s22, %s1811_s21 }
  0x11   : > { %p79_p4 = scmp.eq.s32.totalorder %s1949_s25, 0  ;;  %p396_p7 = scmp.eq.s32.totalorder %s1949_s25, 1 }
  0x12   : > { %s1965_s30 = scalar_select %p63_p1, %s1819_s23, %s65_s28  }
  0x13   : > { %p1967_p5 = por %p73_p2, %p72_p0  ;;  %p1971_p6 = por %p79_p4, %p78_p3 }
  0x14   : > { %2310 = sst [smem:[#allocation12_spill]] %s1965_s30  ;;  %p402_p8 = scmp.eq.s32.totalorder %s1452_s26, 1 }
  0x15   : > { %p1637_p10 = scmp.lt.s32.totalorder %s1823_s24, 2  ;;  %p1978_p11 = por %p396_p7, %p72_p0 }
  0x16   : > { %p1982_p12 = por %p402_p8, %p78_p3  ;;  %s471_s20 = sand.u32 1, %s1819_s23  }
  0x17   : > { %s2313_s18 = scalar_select %p1978_p11, 1, 0 }
  0x18   : > { %s2315_s19 = scalar_select %p1982_p12, 1, 0 }
  0x19   : > { %2314 = sst [smem:[#allocation13_spill]] %s2313_s18  ;;  %s1596_s28 = sshll.u32 %s1823_s24, 3 }
  0x1a   : > { %2316 = sst [smem:[#allocation14_spill]] %s2315_s19  ;;  %s1455_s29 = sshll.u32 %s471_s20, 3 }
  0x1b   : > { %s2317_s1 = sld [smem:[#allocation16_spill]]  ;;  %s475_s26 = scalar_lea.vmem [#allocation3], %s1455_s29 }
  0x1c   : > { %s483_s16 = sshll.u32 %s475_s26, 4  ;;  %p1993_p13 = pnand %p1637_p10, %p1967_p5  ;;  %s484_s16 = int_to_ptr.vmem [resolvable:$true] %s483_s16 }
  0x1d   : > { %p1458_p0 = scmp.ge.s32.totalorder %s1823_s24, 1  ;;  %p491_p1 = scmp.lt.s32.totalorder %s1823_s24, 3 }
  0x1e   : > { %s472_s23 = scalar_lea.sflag [#allocation4], %s471_s20  ;;  %p1731_p3 = pneg %p1993_p13 }
  0x21   : > { %s480_s21 = scalar_lea.hbm %s2317_s1, %s1596_s28  ;;  %s1734_s30 = scalar_lea.hbm %s2317_s1, 16 }
  0x22   : > { %s481_s15 = sshll.u32 %s480_s21, 4  ;;  %s482_s15 = int_to_ptr.hbm [resolvable:$true] %s481_s15 }
  0x23   : > { %s1727_s19 = sshra.s32 %s482_s15, 4  ;;  %s1728_s19 = int_to_ptr.hbm [resolvable:$true] %s1727_s19 }
  0x24   : > { %s1729_s18 = scalar_lea.hbm %s1728_s19, 8  ;;  %p1735_p5 = scmp.lt.s32.totalorder %s1728_s19, %s2317_s1 }
  0x25   : > { %p1730_p2 = scmp.ne.s32.totalorder %s1728_s19, %s1729_s18  ;;  %p1736_p8 = scmp.lt.s32.totalorder %s1734_s30, %s1729_s18 }
  0x27   : > { %p1732_p4 = pnand %p1731_p3, %p1730_p2  ;;  %p1737_p10 = por %p1736_p8, %p1735_p5 }
  0x29   : > { %p1733_p7 = pneg %p1732_p4 }
  0x2b   : > { %p1738_p9 = pnand %p1737_p10, %p1733_p7 }
  0x2d   : > { %1741 = shalt.err (!%p1738_p9)
}
  0x2e   : > { %s1825_s20 = smov 64   ;;  %s1826_s29 = smov 4  }
  0x2f   : > { %1632 = dma.hbm_to_vmem [thread:$0]  (!%p1993_p13), %s482_s15, 128, %s484_s16, %s472_s23, %s1825_s20, %s1825_s20, %s1826_s29  }
  0x30   : > { %p492_p2 = pnand %p1458_p0, %p491_p1 }
  0x31   : > { %s2014_s26 = sand.u32 (!%p492_p2), 1, %s1815_s22  }
  0x32   : > { %495 = sbr.rel (%p492_p2) target bundleno = 2285 (0x8ed), region = 84  ;;  %s2301_s18 = sshll.u32 (!%p492_p2), %s2014_s26, 3 }
  0x33   : > { %s498_s19 = scalar_lea.sflag (!%p492_p2), [#allocation4], %s2014_s26  ;;  %s501_s21 = scalar_lea.vmem (!%p492_p2), [#allocation3], %s2301_s18 }
  0x37   : > { %1802 = dma.done.wait (%p1971_p6), %s498_s19, 128  }
  0x38   : > { %1804 = vsyncadd (%p1971_p6), %s498_s19, 4294967168  ;;  %p555_p9 = scmp.lt.s32.totalorder %s1949_s25, 1  ;;  %v1600_v0 = vld [vmem:[%s2278_s2 + $0x10] sm:$0xff]  ;;  %v1599_v2 = vld [vmem:[%s2278_s2 + $0x8] sm:$0xff]  ;;  %s2319_s18 = sld [smem:[#allocation15_spill]]  ;;  %vm593_vm0 = vcmask 392192  }
  0x39   : > { %v1603_v1 = vld [vmem:[%s2280_s4 + $0x10] sm:$0xff]  ;;  %602 = vmatpush.bf16.msra.mxu0 %v1600_v0  ;;  %v1602_v3 = vld [vmem:[%s2280_s4 + $0x8] sm:$0xff]  ;;  %v1598_v4 = vld [vmem:[%s2278_s2] sm:$0xff]  ;;  %vm668_vm1 = vcmask 64512   ;;  %s1828_s17 = smov 80   ;;  %s1829_s20 = smov 104  }
  0x3a   : > { %s556_s14 = scalar_select %p555_p9, %s1949_s25, 1  ;;  %651 = vmatpush.bf16.msra.mxu1 %v1603_v1  ;;  %v1601_v5 = vld [vmem:[%s2280_s4] sm:$0xff]  ;;  %v1597_v8 = vld [vmem:[%s501_s21] sm:$0xff]  ;;  %vm689_vm2 = vcmask 130048   ;;  %vm1021_vm3 = vcmask 195584   ;;  %vm1023_vm4 = vcmask 261120  }
  0x3b   : > { %v1689_v9 = vld [vmem:[%s2279_s3] ss:$0 sm:$0xff]  ;;  %s1827_s21 = smov 120   ;;  %s1830_s29 = smov 88   ;;  %vm1025_vm5 = vcmask 326656   ;;  %vm1290_vm10 = vcmask 523264  }
  0x3c   : > { %s1461_s30 = sshll.u32 %s556_s14, 3  ;;  %v1690_v13 = vld [vmem:[%s2281_s5] ss:$0 sm:$0xff]  ;;  %s1831_s19 = smov 112  }
  0x3d   : > { %603 = vmatpush.bf16.msra.mxu0 %v1599_v2  ;;  %s1833_s16 = smov 72   ;;  %s1834_s23 = smov 64  }
  0x3e   : > { %s558_s15 = scalar_lea.vmem %s2319_s18, %s1461_s30  ;;  %652 = vmatpush.bf16.msra.mxu1 %v1602_v3  ;;  %s1835_s14 = smov 40  }
  0x3f   : > { %v2047_v6 = vld [vmem:[%s558_s15] sm:$0xff]  ;;  %s1832_s15 = smov 96   ;;  %s1836_s27 = smov 56  }
  0x40   : > { %v564_v7 = vpack.c.bf16 %v2047_v6, %v2047_v6  ;;  %s1837_s18 = smov 48   ;;  %s1838_s30 = smov 16  }
  0x41   : > { %604 = vmatpush.bf16.msra.mxu0 %v1598_v4  ;;  %s1839_s0 = smov 24   ;;  %s1840_s28 = smov 8  }
  0x42   : > { %653 = vmatpush.bf16.msra.mxu1 %v1601_v5 }
  0x44   : > { %1474 = vmatmul.msk.bf16.vlgmr.msra.gmra.mxu0 %vm593_vm0, %v564_v7 }
  0x45   : > { %1491 = vmatmul.msk.bf16.vlgmr.msra.gmra.mxu1 %vm593_vm0, %v1597_v8 }
  0xc1   : > { %v606_v10 = vpop.f32.mrf.mxu0 }
  0xc2   : > { %v655_v11 = vpop.f32.mrf.mxu1  ;;  %v607_v12 = vadd.f32 %v1689_v9, %v606_v10 }
  0xc3   : > { %v656_v16 = vadd.f32 %v1690_v13, %v655_v11 }
  0xc4   : > { %v660_v14 = vpack.c.bf16 %v607_v12, %v607_v12 }
  0xc5   : > { %v661_v20 = vpack.c.bf16 %v656_v16, %v656_v16 }
  0xc6   : > { %v722_v15 = vunpack.c.l.b16 %v660_v14 }
  0xc7   : > { %v665_v23 = vunpack.c.l.b16 %v661_v20 }
  0xc8   : > { %v2059_v17 = vpack.c.b16 %v722_v15, %v722_v15 }
  0xc9   : > { %v608_v19 = vpop.f32.mrf.mxu0 }
  0xca   : > { %v657_v18 = vpop.f32.mrf.mxu1  ;;  %724 = vrot.lane.b32.xlu2 %v2059_v17, %s1827_s21 }
  0xcb   : > { %v658_v21 = vadd.f32 %v1690_v13, %v657_v18 }
  0xcd   : > { %v662_v22 = vpack.c.bf16 %v658_v21, %v658_v21 }
  0xcf   : > { %v666_v24 = vunpack.c.l.b16 %v662_v22 }
  0xd1   : > { %v2062_v25 = vpack.c.b16 %v666_v24, %v665_v23 }
  0xd3   : > { %702 = vrot.lane.b32.xlu1 %v2062_v25, %s1828_s17  ;;  %836 = vrot.lane.b32.xlu2 %v2062_v25, %s1829_s20  ;;  %v673_v26 = vsel %vm668_vm1, %v2062_v25, 0  ;;  %s2321_s17 = sld [smem:[#allocation19_spill]] }
  0xd4   : > { %682 = vmatpush.bf16.xpose.msrb.mxu1 %v673_v26 }
  0xdb   : > { %726 = vrot.lane.b32.xlu1 %v2062_v25, %s1827_s21  ;;  %946 = vrot.lane.b32.xlu2 %v2062_v25, %s1830_s29  ;;  %s1841_s21 = smov 32  }
  0xdc   : > { %1492 = vmatmul.msk.bf16.vlgmr.msrb.gmra.mxu1 %vm668_vm1, %v660_v14 }
  0xe3   : > { %781 = vrot.lane.b32.xlu1 %v2062_v25, %s1831_s19  ;;  %944 = vrot.lane.b32.xlu2 %v2059_v17, %s1830_s29 }
  0xeb   : > { %779 = vrot.lane.b32.xlu1 %v2059_v17, %s1831_s19  ;;  %889 = vrot.lane.b32.xlu2 %v2059_v17, %s1832_s15 }
  0xf3   : > { %891 = vrot.lane.b32.xlu1 %v2062_v25, %s1832_s15 }
 0x124   : > { %v725_v27 = vpop.permute.xlu2 %724 }
 0x12d   : > { %v837_v31 = vpop.permute.xlu2 %836 }
 0x12e   : > { %v842_v61 = vsel %vm668_vm1, %v837_v31, 0 }
 0x135   : > { %v947_v34 = vpop.permute.xlu2 %946 }
 0x136   : > { %v952_v62 = vsel %vm668_vm1, %v947_v34, 0 }
 0x13d   : > { %v945_v40 = vpop.permute.xlu2 %944 }
 0x145   : > { %v703_v28 = vpop.permute.xlu1 %702  ;;  %v890_v43 = vpop.permute.xlu2 %889 }
 0x146   : > { %715 = vmatpush.bf16.msra.mxu3 %v703_v28 }
 0x14d   : > { %v727_v29 = vpop.permute.xlu1 %726 }
 0x14e   : > { %v732_v30 = vsel %vm668_vm1, %v727_v29, 0 }
 0x14f   : > { %741 = vmatpush.bf16.xpose.msrb.mxu3 %v732_v30 }
 0x155   : > { %v782_v32 = vpop.permute.xlu1 %781 }
 0x156   : > { %v787_v33 = vsel %vm668_vm1, %v782_v32, 0 }
 0x157   : > { %796 = vmatpush.bf16.xpose.msrb.mxu0 %v787_v33 }
 0x159   : > { %v684_v35 = vpop.f32.mrf.mxu1 }
 0x15a   : > { %v688_v36 = vmul.f32 0.35355338, %v684_v35 }
 0x15c   : > { %v690_v37 = vsel %vm689_vm2, %v688_v36, -inf }
 0x15d   : > { %691 = vmax.xlane.f32.xlu0 %v690_v37  ;;  %v780_v38 = vpop.permute.xlu1 %779 }
 0x15e   : > { %1496 = vmatmul.msk.bf16.vlgmr.msrb.gmra.mxu0 %vm668_vm1, %v780_v38 }
 0x161   : > { %v686_v39 = vpop.f32.mrf.mxu1 }
 0x165   : > { %v892_v41 = vpop.permute.xlu1 %891 }
 0x166   : > { %v897_v42 = vsel %vm668_vm1, %v892_v41, 0 }
 0x167   : > { %906 = vmatpush.bf16.xpose.msra.mxu0 %v897_v42 }
 0x16e   : > { %1500 = vmatmul.msk.bf16.vlgmr.msra.gmra.mxu0 %vm668_vm1, %v890_v43 }
 0x1d0   : > { %v692_v44 = vpop.xlane.xlu0 %691 }
 0x1d1   : > { %v693_v45 = vsub.f32 %v688_v36, %v692_v44 }
 0x1d3   : > { %v694_v46 = vmul.f32 1.442695, %v693_v45 }
 0x1d5   : > { %1697 = vpow2.f32 %v694_v46 }
 0x1db   : > { %v1698_v47 = vpop.eup %1697  ;;  %v798_v48 = vpop.f32.mrf.mxu0 }
 0x1dc   : > { %v802_v49 = vmul.f32 0.35355338, %v798_v48  ;;  %v696_v50 = vsel %vm689_vm2, %v1698_v47, 0.0 }
 0x1dd   : > { %697 = vadd.xlane.f32.xlu0 %v696_v50 }
 0x1de   : > { %v803_v51 = vsel %vm689_vm2, %v802_v49, -inf }
 0x1df   : > { %804 = vmax.xlane.f32.xlu2 %v803_v51 }
 0x1e3   : > { %v800_v52 = vpop.f32.mrf.mxu0 }
 0x1eb   : > { %v908_v53 = vpop.f32.mrf.mxu0 }
 0x1ec   : > { %v2085_v54 = vmul.f32 0.35355338, %v908_v53 }
 0x1ee   : > { %v913_v55 = vsel %vm689_vm2, %v2085_v54, -inf }
 0x1ef   : > { %914 = vmax.xlane.f32.xlu2 %v913_v55 }
 0x1f1   : > { %834 = vrot.lane.b32.xlu0 %v2059_v17, %s1829_s20 }
 0x1f3   : > { %v910_v56 = vpop.f32.mrf.mxu0 }
 0x250   : > { %v698_v57 = vpop.xlane.xlu0 %697 }
 0x251   : > { %1699 = vrcp.f32 %v698_v57 }
 0x252   : > { %v805_v5 = vpop.xlane.xlu2 %804 }
 0x253   : > { %v806_v8 = vsub.f32 %v802_v49, %v805_v5 }
 0x255   : > { %v807_v9 = vmul.f32 1.442695, %v806_v8 }
 0x257   : > { %v1700_v58 = vpop.eup %1699  ;;  %1701 = vpow2.f32 %v807_v9 }
 0x258   : > { %v700_v59 = vmul.f32 %v1700_v58, %v1698_v47 }
 0x25a   : > { %v701_v60 = vpack.c.bf16 %v700_v59, %v700_v59 }
 0x25c   : > { %1493 = vmatmul.msk.bf16.vlgmr.msra.gmra.mxu3 %vm689_vm2, %v701_v60 }
 0x25d   : > { %851 = vmatpush.bf16.xpose.msra.mxu3 %v842_v61  ;;  %v1702_v13 = vpop.eup %1701 }
 0x25e   : > { %v809_v15 = vsel %vm689_vm2, %v1702_v13, 0.0 }
 0x262   : > { %v915_v37 = vpop.xlane.xlu2 %914 }
 0x263   : > { %v835_v63 = vpop.permute.xlu0 %834  ;;  %v916_v38 = vsub.f32 %v2085_v54, %v915_v37 }
 0x265   : > { %v917_v39 = vmul.f32 1.442695, %v916_v38 }
 0x26c   : > { %1494 = vmatmul.msk.bf16.vlgmr.msrb.gmra.mxu3 %vm668_vm1, %v725_v27 }
 0x26d   : > { %961 = vmatpush.bf16.xpose.msrb.mxu3 %v952_v62 }
 0x27c   : > { %1498 = vmatmul.msk.bf16.vlgmr.msra.gmra.mxu3 %vm668_vm1, %v835_v63 }
 0x28c   : > { %1502 = vmatmul.msk.bf16.vlgmr.msrb.gmra.mxu3 %vm668_vm1, %v945_v40 }
 0x2df   : > { %v2097_v0 = vpop.f32.mrf.mxu3 }
 0x2e7   : > { %v719_v1 = vpop.f32.mrf.mxu3 }
 0x2ef   : > { %v743_v2 = vpop.f32.mrf.mxu3 }
 0x2f0   : > { %v747_v3 = vmul.f32 0.35355338, %v743_v2 }
 0x2f2   : > { %v748_v4 = vsel %vm689_vm2, %v747_v3, -inf }
 0x2f3   : > { %749 = vmax.xlane.f32.xlu0 %v748_v4 }
 0x2f7   : > { %v745_v7 = vpop.f32.mrf.mxu3 }
 0x2ff   : > { %v853_v10 = vpop.f32.mrf.mxu3 }
 0x300   : > { %v857_v11 = vmul.f32 0.35355338, %v853_v10 }
 0x302   : > { %v858_v12 = vsel %vm689_vm2, %v857_v11, -inf }
 0x303   : > { %859 = vmax.xlane.f32.xlu1 %v858_v12 }
 0x307   : > { %v855_v14 = vpop.f32.mrf.mxu3 }
 0x308   : > { %v1605_v14 = vld [vmem:[%s2282_s6 + $0x8] sm:$0xff] }
 0x30b   : > { %810 = vadd.xlane.f32.xlu1 %v809_v15  ;;  %v1604_v15 = vld [vmem:[%s2282_s6] sm:$0xff] }
 0x30f   : > { %v963_v16 = vpop.f32.mrf.mxu3 }
 0x310   : > { %v967_v17 = vmul.f32 0.35355338, %v963_v16 }
 0x312   : > { %v968_v18 = vsel %vm689_vm2, %v967_v17, -inf }
 0x313   : > { %969 = vmax.xlane.f32.xlu0 %v968_v18 }
 0x317   : > { %v965_v19 = vpop.f32.mrf.mxu3 }
 0x327   : > { %760 = vrot.lane.b32.xlu0 %v2062_v25, %s1833_s16  ;;  %s2323_s16 = sld [smem:[#allocation18_spill]] }
 0x366   : > { %v750_v20 = vpop.xlane.xlu0 %749 }
 0x367   : > { %v751_v21 = vsub.f32 %v747_v3, %v750_v20 }
 0x369   : > { %v752_v22 = vmul.f32 1.442695, %v751_v21 }
 0x36b   : > { %1703 = vpow2.f32 %v752_v22 }
 0x371   : > { %v1704_v23 = vpop.eup %1703 }
 0x372   : > { %v754_v24 = vsel %vm689_vm2, %v1704_v23, 0.0 }
 0x373   : > { %755 = vadd.xlane.f32.xlu1 %v754_v24 }
 0x376   : > { %v860_v26 = vpop.xlane.xlu1 %859 }
 0x377   : > { %v861_v27 = vsub.f32 %v857_v11, %v860_v26 }
 0x379   : > { %v862_v28 = vmul.f32 1.442695, %v861_v27 }
 0x37b   : > { %1705 = vpow2.f32 %v862_v28 }
 0x37e   : > { %v811_v42 = vpop.xlane.xlu1 %810 }
 0x381   : > { %v1706_v29 = vpop.eup %1705 }
 0x382   : > { %v864_v30 = vsel %vm689_vm2, %v1706_v29, 0.0 }
 0x383   : > { %865 = vadd.xlane.f32.xlu2 %v864_v30 }
 0x386   : > { %v970_v31 = vpop.xlane.xlu0 %969 }
 0x387   : > { %v971_v32 = vsub.f32 %v967_v17, %v970_v31 }
 0x389   : > { %v972_v33 = vmul.f32 1.442695, %v971_v32 }
 0x38b   : > { %1707 = vpow2.f32 %v972_v33 }
 0x38c   : > { %815 = vrot.lane.b32.xlu1 %v2062_v25, %s1834_s23  ;;  %1709 = vpow2.f32 %v917_v39 }
 0x391   : > { %v1708_v34 = vpop.eup %1707 }
 0x392   : > { %v974_v35 = vsel %vm689_vm2, %v1708_v34, 0.0  ;;  %v1710_v40 = vpop.eup %1709 }
 0x393   : > { %975 = vadd.xlane.f32.xlu0 %v974_v35  ;;  %v919_v41 = vsel %vm689_vm2, %v1710_v40, 0.0 }
 0x394   : > { %980 = vrot.lane.b32.xlu1 %v2062_v25, %s1835_s14 }
 0x399   : > { %v761_v36 = vpop.permute.xlu0 %760 }
 0x39a   : > { %773 = vmatpush.bf16.msra.mxu2 %v761_v36 }
 0x39b   : > { %870 = vrot.lane.b32.xlu2 %v2062_v25, %s1836_s27  ;;  %s1593_s27 = sshll.u32 %s1949_s25, 3  ;;  %s2324_s25 = sshll.u32 %s2014_s26, 3 }
 0x39c   : > { %925 = vrot.lane.b32.xlu1 %v2062_v25, %s1837_s18  ;;  %s1365_s20 = scalar_lea.hbm %s2321_s17, %s1593_s27  ;;  %s554_s23 = scalar_lea.vmem [#allocation6], %s2324_s25 }
 0x39d   : > { %s1369_s1 = sshll.u32 %s1365_s20, 4  ;;  %s1355_s18 = scalar_lea.sflag [#allocation5], %s2014_s26  ;;  %s1370_s1 = int_to_ptr.hbm [resolvable:$true] %s1369_s1 }
 0x3c4   : > { %920 = vadd.xlane.f32.xlu2 %v919_v41 }
 0x3e6   : > { %v756_v43 = vpop.xlane.xlu1 %755 }
 0x3e7   : > { %1711 = vrcp.f32 %v756_v43 }
 0x3e8   : > { %1713 = vrcp.f32 %v811_v42 }
 0x3ed   : > { %v1712_v44 = vpop.eup %1711 }
 0x3ee   : > { %v758_v45 = vmul.f32 %v1712_v44, %v1704_v23  ;;  %v1714_v25 = vpop.eup %1713 }
 0x3ef   : > { %v813_v48 = vmul.f32 %v1714_v25, %v1702_v13  ;;  %v1606_v13 = vld [vmem:[%s2282_s6 + $0x10] sm:$0xff] }
 0x3f0   : > { %v759_v46 = vpack.c.bf16 %v758_v45, %v758_v45  ;;  %1066 = vmatpush.bf16.msrb.mxu0 %v1606_v13  ;;  %v1535_v45 = vld [vmem:[%s2286_s10 + $0x20] sm:$0xf]  ;;  %v1615_v13 = vld [vmem:[%s2288_s12 + $0x10] sm:$0xff] }
 0x3f1   : > { %v814_v53 = vpack.c.bf16 %v813_v48, %v813_v48  ;;  %v1537_v48 = vld [vmem:[%s2286_s10 + $0x28] sm:$0xf0] }
 0x3f2   : > { %1495 = vmatmul.msk.bf16.vlgmr.msra.gmra.mxu2 %vm689_vm2, %v759_v46  ;;  %v1612_v46 = vld [vmem:[%s2286_s10 + $0x24] sm:$0xf0] }
 0x3f3   : > { %v1536_v25 = vor.u32 %v1612_v46, %v1535_v45 }
 0x3f4   : > { %1067 = vmatpush.bf16.msrb.mxu0 %v1605_v14 }
 0x3f6   : > { %v866_v47 = vpop.xlane.xlu2 %865 }
 0x3f7   : > { %1715 = vrcp.f32 %v866_v47  ;;  %v1611_v47 = vld [vmem:[%s2286_s10 + $0x24] sm:$0xf] }
 0x3f8   : > { %1068 = vmatpush.bf16.msrb.mxu0 %v1604_v15 }
 0x3fd   : > { %v1716_v49 = vpop.eup %1715 }
 0x3fe   : > { %v868_v50 = vmul.f32 %v1716_v49, %v1706_v29  ;;  %v871_v51 = vpop.permute.xlu2 %870  ;;  %v816_v52 = vpop.permute.xlu1 %815  ;;  %v1540_v49 = vor.u32 %v1611_v47, %v1537_v48 }
 0x3ff   : > { %828 = vmatpush.bf16.msra.mxu1 %v816_v52  ;;  %883 = vmatpush.bf16.msrb.mxu2 %v871_v51  ;;  %v1610_v51 = vld [vmem:[%s2286_s10 + $0x14] sm:$0xf0]  ;;  %v1609_v52 = vld [vmem:[%s2286_s10 + $0x14] sm:$0xf] }
 0x400   : > { %v869_v54 = vpack.c.bf16 %v868_v50, %v868_v50  ;;  %1178 = vmatpush.bf16.msra.mxu3 %v1540_v49  ;;  %v1527_v50 = vld [vmem:[%s2286_s10 + $0x10] sm:$0xf] }
 0x402   : > { %1497 = vmatmul.msk.bf16.vlgmr.msra.gmra.mxu1 %vm689_vm2, %v814_v53  ;;  %1499 = vmatmul.msk.bf16.vlgmr.msrb.gmra.mxu2 %vm689_vm2, %v869_v54  ;;  %v1528_v53 = vor.u32 %v1610_v51, %v1527_v50  ;;  %v1529_v54 = vld [vmem:[%s2286_s10 + $0x18] sm:$0xf0] }
 0x406   : > { %v981_v55 = vpop.permute.xlu1 %980  ;;  %v976_v56 = vpop.xlane.xlu0 %975 }
 0x407   : > { %1717 = vrcp.f32 %v976_v56  ;;  %993 = vmatpush.bf16.msra.mxu2 %v981_v55  ;;  %v1532_v55 = vor.u32 %v1609_v52, %v1529_v54  ;;  %v1519_v56 = vld [vmem:[%s2286_s10] sm:$0xf] }
 0x409   : > { %1179 = vmatpush.bf16.msra.mxu3 %v1532_v55 }
 0x40d   : > { %v1718_v57 = vpop.eup %1717 }
 0x40e   : > { %v978_v58 = vmul.f32 %v1718_v57, %v1708_v34  ;;  %v926_v59 = vpop.permute.xlu1 %925  ;;  %v1842_v34 = vmov 48.0   ;;  %v1608_v57 = vld [vmem:[%s2286_s10 + $0x4] sm:$0xf0] }
 0x40f   : > { %938 = vmatpush.bf16.msrb.mxu1 %v926_v59  ;;  %v1520_v59 = vor.u32 %v1608_v57, %v1519_v56 }
 0x410   : > { %v979_v60 = vpack.c.bf16 %v978_v58, %v978_v58  ;;  %v1607_v58 = vld [vmem:[%s2286_s10 + $0x4] sm:$0xf] }
 0x412   : > { %1503 = vmatmul.msk.bf16.vlgmr.msra.gmra.mxu2 %vm689_vm2, %v979_v60  ;;  %v1521_v60 = vld [vmem:[%s2286_s10 + $0x8] sm:$0xf0] }
 0x413   : > { %1165 = vmatpush.bf16.msra.mxu1 %v1536_v25 }
 0x417   : > { %1166 = vmatpush.bf16.msra.mxu1 %v1528_v53 }
 0x41b   : > { %1167 = vmatpush.bf16.msra.mxu1 %v1520_v59 }
 0x437   : > { %v921_v61 = vpop.xlane.xlu2 %920 }
 0x438   : > { %1719 = vrcp.f32 %v921_v61  ;;  %v1524_v61 = vor.u32 %v1607_v58, %v1521_v60 }
 0x439   : > { %1721 = vrcp.f32 %v1842_v34 }
 0x43a   : > { %1180 = vmatpush.bf16.msra.mxu3 %v1524_v61 }
 0x43e   : > { %v1720_v62 = vpop.eup %1719 }
 0x43f   : > { %v923_v63 = vmul.f32 %v1720_v62, %v1710_v40  ;;  %v1722_v35 = vpop.eup %1721  ;;  %v1620_v62 = vld [vmem:[%s2288_s12 + $0x38] sm:$0xff] }
 0x440   : > { %v1079_v36 = vmul.f32 48.0, %v1722_v35  ;;  %vm1083_vm6 = vweird.f32 %v1722_v35  ;;  %1294 = vmatpush.bf16.msrb.mxu2 %v1620_v62 }
 0x441   : > { %v924_v1 = vpack.c.bf16 %v923_v63, %v923_v63 }
 0x442   : > { %v1080_v37 = vsub.f32 1.0, %v1079_v36 }
 0x443   : > { %1501 = vmatmul.msk.bf16.vlgmr.msrb.gmra.mxu1 %vm689_vm2, %v924_v1 }
 0x444   : > { %v1081_v38 = vmul.f32 %v1722_v35, %v1080_v37 }
 0x446   : > { %v1082_v39 = vadd.f32 %v1722_v35, %v1081_v38 }
 0x448   : > { %v2139_v40 = vsel %vm1083_vm6, %v1722_v35, %v1082_v39 }
 0x475   : > { %v775_v2 = vpop.f32.mrf.mxu2 }
 0x47d   : > { %v777_v3 = vpop.f32.mrf.mxu2 }
 0x47e   : > { %v1624_v3 = vld [vmem:[%s2288_s12 + $0x58] sm:$0xff] }
 0x47f   : > { %v830_v4 = vpop.f32.mrf.mxu1  ;;  %1311 = vmatpush.bf16.msra.mxu0 %v1624_v3 }
 0x480   : > { %1004 = vrot.lane.b32.xlu1 %v830_v4, %s1838_s30  ;;  %s1771_s30 = sshra.s32 %s1370_s1, 4  ;;  %s1772_s30 = int_to_ptr.hbm [resolvable:$true] %s1771_s30 }
 0x481   : > { %s1773_s27 = scalar_lea.hbm %s1772_s30, 8  ;;  %p1778_p1 = scmp.lt.s32.totalorder %s1772_s30, %s2321_s17 }
 0x482   : > { %p1774_p6 = scmp.ne.s32.totalorder %s1772_s30, %s1773_s27 }
 0x484   : > { %p1775_p13 = pnand %p1774_p6, %p1978_p11 }
 0x485   : > { %v885_v5 = vpop.f32.mrf.mxu2 }
 0x486   : > { %1008 = vrot.lane.b32.xlu0 %v885_v5, %s1839_s0  ;;  %v1618_v5 = vld [vmem:[%s2288_s12 + $0x28] sm:$0xff]  ;;  %s2320_s0 = sld [smem:[#allocation17_spill]]  ;;  %p1776_p0 = pneg %p1775_p13 }
 0x487   : > { %v832_v7 = vpop.f32.mrf.mxu1 }
 0x488   : > { %1000 = vrot.lane.b32.xlu1 %v775_v2, %s1840_s28  ;;  %v1619_v2 = vld [vmem:[%s2288_s12 + $0x30] sm:$0xff]  ;;  %v1617_v7 = vld [vmem:[%s2288_s12 + $0x20] sm:$0xff] }
 0x489   : > { %1295 = vmatpush.bf16.msrb.mxu2 %v1619_v2  ;;  %v1696_v2 = vld [vmem:[%s2323_s16] ss:$0 sm:$0xff] }
 0x48d   : > { %v887_v8 = vpop.f32.mrf.mxu2  ;;  %1296 = vmatpush.bf16.msrb.mxu2 %v1618_v5 }
 0x491   : > { %1297 = vmatpush.bf16.msrb.mxu2 %v1617_v7 }
 0x495   : > { %v995_v9 = vpop.f32.mrf.mxu2 }
 0x496   : > { %1016 = vrot.lane.b32.xlu2 %v995_v9, %s1835_s14  ;;  %s1367_s14 = sshll.u32 %s554_s23, 4  ;;  %s1368_s14 = int_to_ptr.vmem [resolvable:$true] %s1367_s14 }
 0x49d   : > { %v997_v10 = vpop.f32.mrf.mxu2 }
 0x49e   : > { %v1616_v10 = vld [vmem:[%s2288_s12 + $0x18] sm:$0xff] }
 0x49f   : > { %1298 = vmatpush.bf16.msrb.mxu2 %v1616_v10 }
 0x4a3   : > { %1299 = vmatpush.bf16.msrb.mxu2 %v1615_v13 }
 0x4c0   : > { %v940_v11 = vpop.f32.mrf.mxu1 }
 0x4c1   : > { %1012 = vrot.lane.b32.xlu1 %v940_v11, %s1841_s21  ;;  %s1777_s21 = scalar_lea.hbm %s2321_s17, 16 }
 0x4c2   : > { %p1779_p3 = scmp.lt.s32.totalorder %s1777_s21, %s1773_s27 }
 0x4c4   : > { %p1780_p4 = por %p1779_p3, %p1778_p1 }
 0x4c6   : > { %p1781_p7 = pnand %p1780_p4, %p1776_p0 }
 0x4c8   : > { %v942_v12 = vpop.f32.mrf.mxu1 }
 0x4f0   : > { %v1017_v23 = vpop.permute.xlu2 %1016 }
 0x4f2   : > { %v1005_v16 = vpop.permute.xlu1 %1004 }
 0x4f8   : > { %v1009_v20 = vpop.permute.xlu0 %1008 }
 0x4fa   : > { %v1001_v17 = vpop.permute.xlu1 %1000 }
 0x4fb   : > { %v1019_v18 = vsel %vm668_vm1, %v2097_v0, %v1001_v17  ;;  %v1691_v0 = vld [vmem:[%s2283_s7] ss:$0 sm:$0xff] }
 0x4fc   : > { %v1020_v19 = vsel %vm689_vm2, %v1019_v18, %v1005_v16  ;;  %v1692_v16 = vld [vmem:[%s2284_s8] ss:$0 sm:$0xff] }
 0x4fd   : > { %v1022_v21 = vsel %vm1021_vm3, %v1020_v19, %v1009_v20  ;;  %v1693_v18 = vld [vmem:[%s2285_s9] ss:$0 sm:$0xff] }
 0x533   : > { %v1013_v22 = vpop.permute.xlu1 %1012 }
 0x534   : > { %v1024_v24 = vsel %vm1023_vm4, %v1022_v21, %v1013_v22 }
 0x535   : > { %v1026_v26 = vsel %vm1025_vm5, %v1024_v24, %v1017_v23  ;;  %v1614_v23 = vld [vmem:[%s2288_s12 + $0x8] sm:$0xff]  ;;  %v1623_v24 = vld [vmem:[%s2288_s12 + $0x50] sm:$0xff] }
 0x536   : > { %1027 = vst.msk [vmem:[#allocation2] sm:$0xff] %vm593_vm0, %v1026_v26  ;;  %1300 = vmatpush.bf16.msrb.mxu2 %v1614_v23  ;;  %1312 = vmatpush.bf16.msra.mxu0 %v1623_v24  ;;  %v1613_v26 = vld [vmem:[%s2288_s12] sm:$0xff] }
 0x53a   : > { %1301 = vmatpush.bf16.msrb.mxu2 %v1613_v26 }
 0x53d   : > { %v1028_v27 = vld [vmem:[#allocation2] sm:$0xff] }
 0x53e   : > { %v1029_v28 = vpack.c.bf16 %v1028_v27, %v1028_v27  ;;  %v1622_v27 = vld [vmem:[%s2288_s12 + $0x48] sm:$0xff] }
 0x53f   : > { %1313 = vmatpush.bf16.msra.mxu0 %v1622_v27 }
 0x540   : > { %1516 = vmatmul.msk.bf16.vlgmr.msrb.gmra.mxu0 %vm593_vm0, %v1029_v28  ;;  %v1621_v28 = vld [vmem:[%s2288_s12 + $0x40] sm:$0xff] }
 0x543   : > { %1314 = vmatpush.bf16.msra.mxu0 %v1621_v28 }
 0x5bd   : > { %v1070_v29 = vpop.f32.mrf.mxu0 }
 0x5be   : > { %v1071_v30 = vadd.f32 %v1691_v0, %v1070_v29  ;;  %v1115_v0 = vld [vmem:[%s2287_s11] sm:$0x3] }
 0x5bf   : > { %v1123_v29 = vperm.slane %v1115_v0, 0 }
 0x5c0   : > { %v1074_v31 = vadd.f32 %v1071_v30, %v2047_v6 }
 0x5c2   : > { %v1075_v32 = vsel %vm593_vm0, %v1074_v31, 0.0 }
 0x5c3   : > { %1076 = vadd.xlane.f32.xlu1 %v1075_v32 }
 0x5c5   : > { %v1072_v33 = vpop.f32.mrf.mxu0 }
 0x5c6   : > { %v1124_v33 = vperm.slane %v1115_v0, 1 }
 0x636   : > { %v1077_v41 = vpop.xlane.xlu1 %1076 }
 0x637   : > { %v1085_v42 = vmul.f32 %v2139_v40, %v1077_v41 }
 0x639   : > { %v1086_v43 = vsub.f32 %v1074_v31, %v1085_v42  ;;  %v1694_v42 = vld [vmem:[%s2289_s13] ss:$0 sm:$0xff] }
 0x63b   : > { %v1087_v44 = vmul.f32 %v1086_v43, %v1086_v43 }
 0x63d   : > { %v1088_v6 = vsel %vm593_vm0, %v1087_v44, 0.0 }
 0x63e   : > { %1089 = vadd.xlane.f32.xlu0 %v1088_v6 }
 0x6b1   : > { %v1090_v63 = vpop.xlane.xlu0 %1089 }
 0x6b2   : > { %v1091_v1 = vmul.f32 %v1090_v63, %v2139_v40  ;;  %v1695_v63 = vld [vmem:[%s2320_s0] ss:$0 sm:$0xff] }
 0x6b4   : > { %v1092_v4 = vadd.f32 1e-05, %v1091_v1 }
 0x6b6   : > { %1723 = vrsqrt.f32 %v1092_v4  ;;  %vm1099_vm8 = vweird.f32 %v1092_v4 }
 0x6bc   : > { %v1724_v8 = vpop.eup %1723 }
 0x6bd   : > { %v1094_v9 = vmul.f32 %v1724_v8, %v1092_v4  ;;  %vm1100_vm7 = vweird.f32 %v1724_v8 }
 0x6be   : > { %vm1101_vm9 = vmor %vm1099_vm8, %vm1100_vm7 }
 0x6bf   : > { %v1095_v11 = vmul.f32 %v1724_v8, %v1094_v9 }
 0x6c1   : > { %v1096_v12 = vmul.f32 0.5, %v1095_v11 }
 0x6c3   : > { %v1097_v14 = vsub.f32 1.5, %v1096_v12 }
 0x6c5   : > { %v1098_v15 = vmul.f32 %v1724_v8, %v1097_v14 }
 0x6c7   : > { %v1102_v17 = vsel %vm1101_vm9, %v1724_v8, %v1098_v15 }
 0x6c8   : > { %v1103_v19 = vmul.f32 %v1102_v17, %v1086_v43 }
 0x6ca   : > { %v1108_v20 = vmul.f32 %v1692_v16, %v1103_v19 }
 0x6cc   : > { %v1113_v21 = vadd.f32 %v1693_v18, %v1108_v20 }
 0x6ce   : > { %v1114_v22 = vpack.c.bf16 %v1113_v21, %v1113_v21 }
 0x6d0   : > { %1541 = vmatmul.msk.bf16.vlgmr.msra.gmra.mxu1 %vm593_vm0, %v1114_v22  ;;  %1542 = vmatmul.msk.bf16.vlgmr.msra.gmra.mxu3 %vm593_vm0, %v1114_v22 }
 0x74d   : > { %v1169_v30 = vpop.f32.mrf.mxu1 }
 0x74e   : > { %v1170_v31 = vadd.f32 %v1169_v30, %v1123_v29 }
 0x750   : > { %v1186_v32 = vmax.f32 %v1170_v31, 0.0 }
 0x752   : > { %v1188_v34 = vpack.c.bf16 %v1186_v32, %v1186_v32 }
 0x753   : > { %v1182_v35 = vpop.f32.mrf.mxu3 }
 0x754   : > { %v1183_v36 = vadd.f32 %v1182_v35, %v1124_v33  ;;  %1302 = vmatmul.bf16.vlgmr.msrb.gmra.mxu2 %v1188_v34 }
 0x755   : > { %v1171_v37 = vpop.f32.mrf.mxu1 }
 0x756   : > { %v1187_v38 = vmax.f32 %v1183_v36, 0.0 }
 0x758   : > { %v1189_v39 = vpack.c.bf16 %v1187_v38, %v1187_v38 }
 0x75a   : > { %1591 = vmatmul.msk.bf16.vlgmr.msra.gmra.mxu0 %vm1290_vm10, %v1189_v39 }
 0x75b   : > { %v1184_v41 = vpop.f32.mrf.mxu3 }
 0x7d7   : > { %v1303_v43 = vpop.f32.mrf.mxu2  ;;  %v1316_v44 = vpop.f32.mrf.mxu0 }
 0x7d8   : > { %v1304_v6 = vadd.f32 %v1694_v42, %v1303_v43 }
 0x7da   : > { %v1317_v45 = vadd.f32 %v1316_v44, %v1304_v6 }
 0x7dc   : > { %v1320_v46 = vadd.f32 %v1317_v45, %v1113_v21 }
 0x7de   : > { %v1321_v47 = vsel %vm593_vm0, %v1320_v46, 0.0 }
 0x7df   : > { %v1305_v25 = vpop.f32.mrf.mxu2  ;;  %v1318_v48 = vpop.f32.mrf.mxu0  ;;  %1322 = vadd.xlane.f32.xlu2 %v1321_v47 }
 0x852   : > { %v1323_v49 = vpop.xlane.xlu2 %1322 }
 0x853   : > { %v1324_v50 = vmul.f32 %v1323_v49, %v2139_v40 }
 0x855   : > { %v1325_v51 = vsub.f32 %v1320_v46, %v1324_v50 }
 0x857   : > { %v1326_v52 = vmul.f32 %v1325_v51, %v1325_v51 }
 0x859   : > { %v1327_v53 = vsel %vm593_vm0, %v1326_v52, 0.0 }
 0x85a   : > { %1328 = vadd.xlane.f32.xlu1 %v1327_v53 }
 0x8cd   : > { %v1329_v54 = vpop.xlane.xlu1 %1328 }
 0x8ce   : > { %v1330_v55 = vmul.f32 %v1329_v54, %v2139_v40 }
 0x8d0   : > { %v1331_v56 = vadd.f32 1e-05, %v1330_v55 }
 0x8d2   : > { %1725 = vrsqrt.f32 %v1331_v56  ;;  %vm1338_vm12 = vweird.f32 %v1331_v56 }
 0x8d8   : > { %v1726_v57 = vpop.eup %1725 }
 0x8d9   : > { %v1333_v58 = vmul.f32 %v1726_v57, %v1331_v56  ;;  %vm1339_vm11 = vweird.f32 %v1726_v57 }
 0x8da   : > { %vm1340_vm13 = vmor %vm1338_vm12, %vm1339_vm11 }
 0x8db   : > { %v1334_v59 = vmul.f32 %v1726_v57, %v1333_v58 }
 0x8dd   : > { %v1335_v60 = vmul.f32 0.5, %v1334_v59 }
 0x8df   : > { %v1336_v61 = vsub.f32 1.5, %v1335_v60 }
 0x8e1   : > { %v1337_v62 = vmul.f32 %v1726_v57, %v1336_v61 }
 0x8e3   : > { %v1341_v40 = vsel %vm1340_vm13, %v1726_v57, %v1337_v62 }
 0x8e4   : > { %v1342_v1 = vmul.f32 %v1341_v40, %v1325_v51 }
 0x8e6   : > { %v1347_v3 = vmul.f32 %v1695_v63, %v1342_v1 }
 0x8e8   : > { %v1352_v4 = vadd.f32 %v1696_v2, %v1347_v3 }
 0x8ea   : > { %1353 = vst.msk [vmem:[%s554_s23] sm:$0xff] %vm593_vm0, %v1352_v4 }
 0x8eb   : > { %1784 = shalt.err (!%p1781_p7)
}
 0x8ec   : > { %1627 = dma.vmem_to_hbm [thread:$0]  (%p1978_p11), %s1368_s14, 128, %s1370_s1, %s1355_s18  }
 0x8ed PF: > { %s2325_s26 = sld [smem:[#allocation9_spill]]  ;;  %p2327_p5 = scmp.ge.s32.totalorder %s1823_s24, 2 }
 0x8ef   : > { %p1634_p8 = pnand %p2327_p5, %p1982_p12 }
 0x8f1   : > { %p1635_p10 = pneg %p1634_p8 }
 0x8f3   : > { %s1381_s16 = sand.u32 1, %s2325_s26  }
 0x8f4   : > { %s1382_s25 = scalar_lea.sflag [#allocation5], %s1381_s16 }
 0x8f5   : > { %1806 = dma.done.wait (%p1635_p10), %s1382_s25, 128  }
 0x8f6   : > { %1808 = vsyncadd (%p1635_p10), %s1382_s25, 4294967168  ;;  %s2328_s24 = sld [smem:[#allocation11_spill]]  ;;  %s2331_s21 = smov %s1815_s22 }
 0x8f7   : > { %s2329_s23 = sld [smem:[#allocation10_spill]] }
 0x8f8   : > { %s2330_s30 = sld [smem:[#allocation12_spill]] }
 0x8fc   : > { %p29_p2 = scmp.ge.s32.totalorder %s2328_s24, 4  }
 0x8fd   : > { %s2332_s22 = smov %s2329_s23 }
 0x8fe   : > { %s2333_s23 = smov %s2330_s30  ;;  %31 = sbr.rel (!%p29_p2) target bundleno = 11 (0xb), region = 132 }
 0x903   :  { %1388 = vsyncpa [#allocation4], 1 }
 0x904   :  { %1390 = vsyncpa [#allocation4 + $0x1], 1 }
 0x905   :  { %1391 = vsyncpa [#allocation5], 1 }
 0x906   :  { %1393 = vsyncpa [#allocation5 + $0x1], 1 }

// kernel: tpu_custom_call.1
= control target key start
LH: loop header
LB: loop body
LE: loop exit
PB: predicated region body
PF: predicated region fallthrough
CT: control target
= control target key end

     0   :  { %s2276_s0 = inlined_call_operand.vmem [shape: f32[16,48], index: 0, kind: input, shape index: {}]   ;;  %s2277_s1 = inlined_call_operand.hbm [shape: bf16[32,48], index: 1, kind: input, shape index: {}]   ;;  %s2278_s2 = inlined_call_operand.vmem [shape: bf16[48,48], index: 2, kind: input, shape index: {}]   ;;  %s2279_s3 = inlined_call_operand.vmem [shape: f32[1,48], index: 3, kind: input, shape index: {}]   ;;  %s2280_s4 = inlined_call_operand.vmem [shape: bf16[48,96], index: 4, kind: input, shape index: {}]   ;;  %s2281_s5 = inlined_call_operand.vmem [shape: f32[1,96], index: 5, kind: input, shape index: {}]   ;;  %s2282_s6 = inlined_call_operand.vmem [shape: bf16[48,48], index: 6, kind: input, shape index: {}]   ;;  %s2283_s7 = inlined_call_operand.vmem [shape: f32[1,48], index: 7, kind: input, shape index: {}]   ;;  %s2284_s8 = inlined_call_operand.vmem [shape: f32[1,48], index: 8, kind: input, shape index: {}]   ;;  %s2285_s9 = inlined_call_operand.vmem [shape: f32[1,48], index: 9, kind: input, shape index: {}]   ;;  %s2286_s10 = inlined_call_operand.vmem [shape: bf16[48,192], index: 10, kind: input, shape index: {}]   ;;  %s2287_s11 = inlined_call_operand.vmem [shape: f32[1,192], index: 11, kind: input, shape index: {}]   ;;  %s2288_s12 = inlined_call_operand.vmem [shape: bf16[192,48], index: 12, kind: input, shape index: {}]   ;;  %s2289_s13 = inlined_call_operand.vmem [shape: f32[1,48], index: 13, kind: input, shape index: {}]   ;;  %s2290_s14 = inlined_call_operand.vmem [shape: f32[1,48], index: 14, kind: input, shape index: {}]   ;;  %s2291_s15 = inlined_call_operand.vmem [shape: f32[1,48], index: 15, kind: input, shape index: {}]   ;;  %s2292_s16 = inlined_call_operand.hbm [shape: f32[16,48], index: 16, kind: output, shape index: {}]  }
   0x1   :  { %2302 = sst [smem:[#allocation15_spill]] %s2276_s0 }
   0x2   :  { %2303 = sst [smem:[#allocation16_spill]] %s2277_s1 }
   0x3   :  { %2304 = sst [smem:[#allocation17_spill]] %s2290_s14 }
   0x4   :  { %2305 = sst [smem:[#allocation18_spill]] %s2291_s15 }
   0x5   :  { %2306 = sst [smem:[#allocation19_spill]] %s2292_s16 }
   0x6   :  { %21 = vsyncpa [#allocation4], 0 }
   0x7   :  { %23 = vsyncpa [#allocation4 + $0x1], 0 }
   0x8   :  { %24 = vsyncpa [#allocation5], 0 }
   0x9   :  { %26 = vsyncpa [#allocation5 + $0x1], 0  ;;  %s1928_s21 = smov 0   ;;  %s1930_s22 = smov 0  }
   0xa   :  { %s1932_s23 = smov 0   ;;  %s1934_s24 = smov 0  }
   0xb LB: > { %2307 = sst [smem:[#allocation9_spill]] %s1811_s21  ;;  %s1949_s25 = sadd.s32 4294967295, %s1823_s24   ;;  %s1823_s24 = sphi %s1934_s24, %s2328_s24   ;;  %s1819_s23 = sphi %s1932_s23, %s2333_s23   ;;  %s1815_s22 = sphi %s1930_s22, %s2332_s22   ;;  %s1811_s21 = sphi %s1928_s21, %s2331_s21  }
   0xc   : > { %2308 = sst [smem:[#allocation10_spill]] %s1819_s23  ;;  %s1452_s26 = sadd.s32 4294967294, %s1823_s24  }
   0xd   : > { %s1953_s27 = sadd.s32 1, %s1823_s24   ;;  %s65_s28 = sadd.s32 1, %s1819_s23 }
   0xe   : > { %2309 = sst [smem:[#allocation11_spill]] %s1953_s27  ;;  %s62_s29 = ssub.s32 %s1823_s24, %s1953_s27 }
   0xf   : > { %p72_p0 = scmp.ne.s32.totalorder %s1819_s23, %s1815_s22  ;;  %p63_p1 = scmp.eq.s32.totalorder %s62_s29, 0 }
  0x10   : > { %p73_p2 = scmp.eq.s32.totalorder %s1823_s24, 0  ;;  %p78_p3 = scmp.ne.s32.totalorder %s1815_s22, %s1811_s21 }
  0x11   : > { %p79_p4 = scmp.eq.s32.totalorder %s1949_s25, 0  ;;  %p396_p7 = scmp.eq.s32.totalorder %s1949_s25, 1 }
  0x12   : > { %s1965_s30 = scalar_select %p63_p1, %s1819_s23, %s65_s28  }
  0x13   : > { %p1967_p5 = por %p73_p2, %p72_p0  ;;  %p1971_p6 = por %p79_p4, %p78_p3 }
  0x14   : > { %2310 = sst [smem:[#allocation12_spill]] %s1965_s30  ;;  %p402_p8 = scmp.eq.s32.totalorder %s1452_s26, 1 }
  0x15   : > { %p1637_p10 = scmp.lt.s32.totalorder %s1823_s24, 2  ;;  %p1978_p11 = por %p396_p7, %p72_p0 }
  0x16   : > { %p1982_p12 = por %p402_p8, %p78_p3  ;;  %s471_s20 = sand.u32 1, %s1819_s23  }
  0x17   : > { %s2313_s18 = scalar_select %p1978_p11, 1, 0 }
  0x18   : > { %s2315_s19 = scalar_select %p1982_p12, 1, 0 }
  0x19   : > { %2314 = sst [smem:[#allocation13_spill]] %s2313_s18  ;;  %s1596_s28 = sshll.u32 %s1823_s24, 3 }
  0x1a   : > { %2316 = sst [smem:[#allocation14_spill]] %s2315_s19  ;;  %s1455_s29 = sshll.u32 %s471_s20, 3 }
  0x1b   : > { %s2317_s1 = sld [smem:[#allocation16_spill]]  ;;  %s475_s26 = scalar_lea.vmem [#allocation3], %s1455_s29 }
  0x1c   : > { %s483_s16 = sshll.u32 %s475_s26, 4  ;;  %p1993_p13 = pnand %p1637_p10, %p1967_p5  ;;  %s484_s16 = int_to_ptr.vmem [resolvable:$true] %s483_s16 }
  0x1d   : > { %p1458_p0 = scmp.ge.s32.totalorder %s1823_s24, 1  ;;  %p491_p1 = scmp.lt.s32.totalorder %s1823_s24, 3 }
  0x1e   : > { %s472_s23 = scalar_lea.sflag [#allocation4], %s471_s20  ;;  %p1731_p3 = pneg %p1993_p13 }
  0x21   : > { %s480_s21 = scalar_lea.hbm %s2317_s1, %s1596_s28  ;;  %s1734_s30 = scalar_lea.hbm %s2317_s1, 16 }
  0x22   : > { %s481_s15 = sshll.u32 %s480_s21, 4  ;;  %s482_s15 = int_to_ptr.hbm [resolvable:$true] %s481_s15 }
  0x23   : > { %s1727_s19 = sshra.s32 %s482_s15, 4  ;;  %s1728_s19 = int_to_ptr.hbm [resolvable:$true] %s1727_s19 }
  0x24   : > { %s1729_s18 = scalar_lea.hbm %s1728_s19, 8  ;;  %p1735_p5 = scmp.lt.s32.totalorder %s1728_s19, %s2317_s1 }
  0x25   : > { %p1730_p2 = scmp.ne.s32.totalorder %s1728_s19, %s1729_s18  ;;  %p1736_p8 = scmp.lt.s32.totalorder %s1734_s30, %s1729_s18 }
  0x27   : > { %p1732_p4 = pnand %p1731_p3, %p1730_p2  ;;  %p1737_p10 = por %p1736_p8, %p1735_p5 }
  0x29   : > { %p1733_p7 = pneg %p1732_p4 }
  0x2b   : > { %p1738_p9 = pnand %p1737_p10, %p1733_p7 }
  0x2d   : > { %1741 = shalt.err (!%p1738_p9)
}
  0x2e   : > { %s1825_s20 = smov 64   ;;  %s1826_s29 = smov 4  }
  0x2f   : > { %1632 = dma.hbm_to_vmem [thread:$0]  (!%p1993_p13), %s482_s15, 128, %s484_s16, %s472_s23, %s1825_s20, %s1825_s20, %s1826_s29  }
  0x30   : > { %p492_p2 = pnand %p1458_p0, %p491_p1 }
  0x31   : > { %s2014_s26 = sand.u32 (!%p492_p2), 1, %s1815_s22  }
  0x32   : > { %495 = sbr.rel (%p492_p2) target bundleno = 2285 (0x8ed), region = 84  ;;  %s2301_s18 = sshll.u32 (!%p492_p2), %s2014_s26, 3 }
  0x33   : > { %s498_s19 = scalar_lea.sflag (!%p492_p2), [#allocation4], %s2014_s26  ;;  %s501_s21 = scalar_lea.vmem (!%p492_p2), [#allocation3], %s2301_s18 }
  0x37   : > { %1802 = dma.done.wait (%p1971_p6), %s498_s19, 128  }
  0x38   : > { %1804 = vsyncadd (%p1971_p6), %s498_s19, 4294967168  ;;  %p555_p9 = scmp.lt.s32.totalorder %s1949_s25, 1  ;;  %v1600_v0 = vld [vmem:[%s2278_s2 + $0x10] sm:$0xff]  ;;  %v1599_v2 = vld [vmem:[%s2278_s2 + $0x8] sm:$0xff]  ;;  %s2319_s18 = sld [smem:[#allocation15_spill]]  ;;  %vm593_vm0 = vcmask 392192  }
  0x39   : > { %v1603_v1 = vld [vmem:[%s2280_s4 + $0x10] sm:$0xff]  ;;  %602 = vmatpush.bf16.msra.mxu0 %v1600_v0  ;;  %v1602_v3 = vld [vmem:[%s2280_s4 + $0x8] sm:$0xff]  ;;  %v1598_v4 = vld [vmem:[%s2278_s2] sm:$0xff]  ;;  %vm668_vm1 = vcmask 64512   ;;  %s1828_s17 = smov 80   ;;  %s1829_s20 = smov 104  }
  0x3a   : > { %s556_s14 = scalar_select %p555_p9, %s1949_s25, 1  ;;  %651 = vmatpush.bf16.msra.mxu1 %v1603_v1  ;;  %v1601_v5 = vld [vmem:[%s2280_s4] sm:$0xff]  ;;  %v1597_v8 = vld [vmem:[%s501_s21] sm:$0xff]  ;;  %vm689_vm2 = vcmask 130048   ;;  %vm1021_vm3 = vcmask 195584   ;;  %vm1023_vm4 = vcmask 261120  }
  0x3b   : > { %v1689_v9 = vld [vmem:[%s2279_s3] ss:$0 sm:$0xff]  ;;  %s1827_s21 = smov 120   ;;  %s1830_s29 = smov 88   ;;  %vm1025_vm5 = vcmask 326656   ;;  %vm1290_vm10 = vcmask 523264  }
  0x3c   : > { %s1461_s30 = sshll.u32 %s556_s14, 3  ;;  %v1690_v13 = vld [vmem:[%s2281_s5] ss:$0 sm:$0xff]  ;;  %s1831_s19 = smov 112  }
  0x3d   : > { %603 = vmatpush.bf16.msra.mxu0 %v1599_v2  ;;  %s1833_s16 = smov 72   ;;  %s1834_s23 = smov 64  }
  0x3e   : > { %s558_s15 = scalar_lea.vmem %s2319_s18, %s1461_s30  ;;  %652 = vmatpush.bf16.msra.mxu1 %v1602_v3  ;;  %s1835_s14 = smov 40  }
  0x3f   : > { %v2047_v6 = vld [vmem:[%s558_s15] sm:$0xff]  ;;  %s1832_s15 = smov 96   ;;  %s1836_s27 = smov 56  }
  0x40   : > { %v564_v7 = vpack.c.bf16 %v2047_v6, %v2047_v6  ;;  %s1837_s18 = smov 48   ;;  %s1838_s30 = smov 16  }
  0x41   : > { %604 = vmatpush.bf16.msra.mxu0 %v1598_v4  ;;  %s1839_s0 = smov 24   ;;  %s1840_s28 = smov 8  }
  0x42   : > { %653 = vmatpush.bf16.msra.mxu1 %v1601_v5 }
  0x44   : > { %1474 = vmatmul.msk.bf16.vlgmr.msra.gmra.mxu0 %vm593_vm0, %v564_v7 }
  0x45   : > { %1491 = vmatmul.msk.bf16.vlgmr.msra.gmra.mxu1 %vm593_vm0, %v1597_v8 }
  0xc1   : > { %v606_v10 = vpop.f32.mrf.mxu0 }
  0xc2   : > { %v655_v11 = vpop.f32.mrf.mxu1  ;;  %v607_v12 = vadd.f32 %v1689_v9, %v606_v10 }
  0xc3   : > { %v656_v16 = vadd.f32 %v1690_v13, %v655_v11 }
  0xc4   : > { %v660_v14 = vpack.c.bf16 %v607_v12, %v607_v12 }
  0xc5   : > { %v661_v20 = vpack.c.bf16 %v656_v16, %v656_v16 }
  0xc6   : > { %v722_v15 = vunpack.c.l.b16 %v660_v14 }
  0xc7   : > { %v665_v23 = vunpack.c.l.b16 %v661_v20 }
  0xc8   : > { %v2059_v17 = vpack.c.b16 %v722_v15, %v722_v15 }
  0xc9   : > { %v608_v19 = vpop.f32.mrf.mxu0 }
  0xca   : > { %v657_v18 = vpop.f32.mrf.mxu1  ;;  %724 = vrot.lane.b32.xlu2 %v2059_v17, %s1827_s21 }
  0xcb   : > { %v658_v21 = vadd.f32 %v1690_v13, %v657_v18 }
  0xcd   : > { %v662_v22 = vpack.c.bf16 %v658_v21, %v658_v21 }
  0xcf   : > { %v666_v24 = vunpack.c.l.b16 %v662_v22 }
  0xd1   : > { %v2062_v25 = vpack.c.b16 %v666_v24, %v665_v23 }
  0xd3   : > { %702 = vrot.lane.b32.xlu1 %v2062_v25, %s1828_s17  ;;  %836 = vrot.lane.b32.xlu2 %v2062_v25, %s1829_s20  ;;  %v673_v26 = vsel %vm668_vm1, %v2062_v25, 0  ;;  %s2321_s17 = sld [smem:[#allocation19_spill]] }
  0xd4   : > { %682 = vmatpush.bf16.xpose.msrb.mxu1 %v673_v26 }
  0xdb   : > { %726 = vrot.lane.b32.xlu1 %v2062_v25, %s1827_s21  ;;  %946 = vrot.lane.b32.xlu2 %v2062_v25, %s1830_s29  ;;  %s1841_s21 = smov 32  }
  0xdc   : > { %1492 = vmatmul.msk.bf16.vlgmr.msrb.gmra.mxu1 %vm668_vm1, %v660_v14 }
  0xe3   : > { %781 = vrot.lane.b32.xlu1 %v2062_v25, %s1831_s19  ;;  %944 = vrot.lane.b32.xlu2 %v2059_v17, %s1830_s29 }
  0xeb   : > { %779 = vrot.lane.b32.xlu1 %v2059_v17, %s1831_s19  ;;  %889 = vrot.lane.b32.xlu2 %v2059_v17, %s1832_s15 }
  0xf3   : > { %891 = vrot.lane.b32.xlu1 %v2062_v25, %s1832_s15 }
 0x124   : > { %v725_v27 = vpop.permute.xlu2 %724 }
 0x12d   : > { %v837_v31 = vpop.permute.xlu2 %836 }
 0x12e   : > { %v842_v61 = vsel %vm668_vm1, %v837_v31, 0 }
 0x135   : > { %v947_v34 = vpop.permute.xlu2 %946 }
 0x136   : > { %v952_v62 = vsel %vm668_vm1, %v947_v34, 0 }
 0x13d   : > { %v945_v40 = vpop.permute.xlu2 %944 }
 0x145   : > { %v703_v28 = vpop.permute.xlu1 %702  ;;  %v890_v43 = vpop.permute.xlu2 %889 }
 0x146   : > { %715 = vmatpush.bf16.msra.mxu3 %v703_v28 }
 0x14d   : > { %v727_v29 = vpop.permute.xlu1 %726 }
 0x14e   : > { %v732_v30 = vsel %vm668_vm1, %v727_v29, 0 }
 0x14f   : > { %741 = vmatpush.bf16.xpose.msrb.mxu3 %v732_v30 }
 0x155   : > { %v782_v32 = vpop.permute.xlu1 %781 }
 0x156   : > { %v787_v33 = vsel %vm668_vm1, %v782_v32, 0 }
 0x157   : > { %796 = vmatpush.bf16.xpose.msrb.mxu0 %v787_v33 }
 0x159   : > { %v684_v35 = vpop.f32.mrf.mxu1 }
 0x15a   : > { %v688_v36 = vmul.f32 0.35355338, %v684_v35 }
 0x15c   : > { %v690_v37 = vsel %vm689_vm2, %v688_v36, -inf }
 0x15d   : > { %691 = vmax.xlane.f32.xlu0 %v690_v37  ;;  %v780_v38 = vpop.permute.xlu1 %779 }
 0x15e   : > { %1496 = vmatmul.msk.bf16.vlgmr.msrb.gmra.mxu0 %vm668_vm1, %v780_v38 }
 0x161   : > { %v686_v39 = vpop.f32.mrf.mxu1 }
 0x165   : > { %v892_v41 = vpop.permute.xlu1 %891 }
 0x166   : > { %v897_v42 = vsel %vm668_vm1, %v892_v41, 0 }
 0x167   : > { %906 = vmatpush.bf16.xpose.msra.mxu0 %v897_v42 }
 0x16e   : > { %1500 = vmatmul.msk.bf16.vlgmr.msra.gmra.mxu0 %vm668_vm1, %v890_v43 }
 0x1d0   : > { %v692_v44 = vpop.xlane.xlu0 %691 }
 0x1d1   : > { %v693_v45 = vsub.f32 %v688_v36, %v692_v44 }
 0x1d3   : > { %v694_v46 = vmul.f32 1.442695, %v693_v45 }
 0x1d5   : > { %1697 = vpow2.f32 %v694_v46 }
 0x1db   : > { %v1698_v47 = vpop.eup %1697  ;;  %v798_v48 = vpop.f32.mrf.mxu0 }
 0x1dc   : > { %v802_v49 = vmul.f32 0.35355338, %v798_v48  ;;  %v696_v50 = vsel %vm689_vm2, %v1698_v47, 0.0 }
 0x1dd   : > { %697 = vadd.xlane.f32.xlu0 %v696_v50 }
 0x1de   : > { %v803_v51 = vsel %vm689_vm2, %v802_v49, -inf }
 0x1df   : > { %804 = vmax.xlane.f32.xlu2 %v803_v51 }
 0x1e3   : > { %v800_v52 = vpop.f32.mrf.mxu0 }
 0x1eb   : > { %v908_v53 = vpop.f32.mrf.mxu0 }
 0x1ec   : > { %v2085_v54 = vmul.f32 0.35355338, %v908_v53 }
 0x1ee   : > { %v913_v55 = vsel %vm689_vm2, %v2085_v54, -inf }
 0x1ef   : > { %914 = vmax.xlane.f32.xlu2 %v913_v55 }
 0x1f1   : > { %834 = vrot.lane.b32.xlu0 %v2059_v17, %s1829_s20 }
 0x1f3   : > { %v910_v56 = vpop.f32.mrf.mxu0 }
 0x250   : > { %v698_v57 = vpop.xlane.xlu0 %697 }
 0x251   : > { %1699 = vrcp.f32 %v698_v57 }
 0x252   : > { %v805_v5 = vpop.xlane.xlu2 %804 }
 0x253   : > { %v806_v8 = vsub.f32 %v802_v49, %v805_v5 }
 0x255   : > { %v807_v9 = vmul.f32 1.442695, %v806_v8 }
 0x257   : > { %v1700_v58 = vpop.eup %1699  ;;  %1701 = vpow2.f32 %v807_v9 }
 0x258   : > { %v700_v59 = vmul.f32 %v1700_v58, %v1698_v47 }
 0x25a   : > { %v701_v60 = vpack.c.bf16 %v700_v59, %v700_v59 }
 0x25c   : > { %1493 = vmatmul.msk.bf16.vlgmr.msra.gmra.mxu3 %vm689_vm2, %v701_v60 }
 0x25d   : > { %851 = vmatpush.bf16.xpose.msra.mxu3 %v842_v61  ;;  %v1702_v13 = vpop.eup %1701 }
 0x25e   : > { %v809_v15 = vsel %vm689_vm2, %v1702_v13, 0.0 }
 0x262   : > { %v915_v37 = vpop.xlane.xlu2 %914 }
 0x263   : > { %v835_v63 = vpop.permute.xlu0 %834  ;;  %v916_v38 = vsub.f32 %v2085_v54, %v915_v37 }
 0x265   : > { %v917_v39 = vmul.f32 1.442695, %v916_v38 }
 0x26c   : > { %1494 = vmatmul.msk.bf16.vlgmr.msrb.gmra.mxu3 %vm668_vm1, %v725_v27 }
 0x26d   : > { %961 = vmatpush.bf16.xpose.msrb.mxu3 %v952_v62 }
 0x27c   : > { %1498 = vmatmul.msk.bf16.vlgmr.msra.gmra.mxu3 %vm668_vm1, %v835_v63 }
 0x28c   : > { %1502 = vmatmul.msk.bf16.vlgmr.msrb.gmra.mxu3 %vm668_vm1, %v945_v40 }
 0x2df   : > { %v2097_v0 = vpop.f32.mrf.mxu3 }
 0x2e7   : > { %v719_v1 = vpop.f32.mrf.mxu3 }
 0x2ef   : > { %v743_v2 = vpop.f32.mrf.mxu3 }
 0x2f0   : > { %v747_v3 = vmul.f32 0.35355338, %v743_v2 }
 0x2f2   : > { %v748_v4 = vsel %vm689_vm2, %v747_v3, -inf }
 0x2f3   : > { %749 = vmax.xlane.f32.xlu0 %v748_v4 }
 0x2f7   : > { %v745_v7 = vpop.f32.mrf.mxu3 }
 0x2ff   : > { %v853_v10 = vpop.f32.mrf.mxu3 }
 0x300   : > { %v857_v11 = vmul.f32 0.35355338, %v853_v10 }
 0x302   : > { %v858_v12 = vsel %vm689_vm2, %v857_v11, -inf }
 0x303   : > { %859 = vmax.xlane.f32.xlu1 %v858_v12 }
 0x307   : > { %v855_v14 = vpop.f32.mrf.mxu3 }
 0x308   : > { %v1605_v14 = vld [vmem:[%s2282_s6 + $0x8] sm:$0xff] }
 0x30b   : > { %810 = vadd.xlane.f32.xlu1 %v809_v15  ;;  %v1604_v15 = vld [vmem:[%s2282_s6] sm:$0xff] }
 0x30f   : > { %v963_v16 = vpop.f32.mrf.mxu3 }
 0x310   : > { %v967_v17 = vmul.f32 0.35355338, %v963_v16 }
 0x312   : > { %v968_v18 = vsel %vm689_vm2, %v967_v17, -inf }
 0x313   : > { %969 = vmax.xlane.f32.xlu0 %v968_v18 }
 0x317   : > { %v965_v19 = vpop.f32.mrf.mxu3 }
 0x327   : > { %760 = vrot.lane.b32.xlu0 %v2062_v25, %s1833_s16  ;;  %s2323_s16 = sld [smem:[#allocation18_spill]] }
 0x366   : > { %v750_v20 = vpop.xlane.xlu0 %749 }
 0x367   : > { %v751_v21 = vsub.f32 %v747_v3, %v750_v20 }
 0x369   : > { %v752_v22 = vmul.f32 1.442695, %v751_v21 }
 0x36b   : > { %1703 = vpow2.f32 %v752_v22 }
 0x371   : > { %v1704_v23 = vpop.eup %1703 }
 0x372   : > { %v754_v24 = vsel %vm689_vm2, %v1704_v23, 0.0 }
 0x373   : > { %755 = vadd.xlane.f32.xlu1 %v754_v24 }
 0x376   : > { %v860_v26 = vpop.xlane.xlu1 %859 }
 0x377   : > { %v861_v27 = vsub.f32 %v857_v11, %v860_v26 }
 0x379   : > { %v862_v28 = vmul.f32 1.442695, %v861_v27 }
 0x37b   : > { %1705 = vpow2.f32 %v862_v28 }
 0x37e   : > { %v811_v42 = vpop.xlane.xlu1 %810 }
 0x381   : > { %v1706_v29 = vpop.eup %1705 }
 0x382   : > { %v864_v30 = vsel %vm689_vm2, %v1706_v29, 0.0 }
 0x383   : > { %865 = vadd.xlane.f32.xlu2 %v864_v30 }
 0x386   : > { %v970_v31 = vpop.xlane.xlu0 %969 }
 0x387   : > { %v971_v32 = vsub.f32 %v967_v17, %v970_v31 }
 0x389   : > { %v972_v33 = vmul.f32 1.442695, %v971_v32 }
 0x38b   : > { %1707 = vpow2.f32 %v972_v33 }
 0x38c   : > { %815 = vrot.lane.b32.xlu1 %v2062_v25, %s1834_s23  ;;  %1709 = vpow2.f32 %v917_v39 }
 0x391   : > { %v1708_v34 = vpop.eup %1707 }
 0x392   : > { %v974_v35 = vsel %vm689_vm2, %v1708_v34, 0.0  ;;  %v1710_v40 = vpop.eup %1709 }
 0x393   : > { %975 = vadd.xlane.f32.xlu0 %v974_v35  ;;  %v919_v41 = vsel %vm689_vm2, %v1710_v40, 0.0 }
 0x394   : > { %980 = vrot.lane.b32.xlu1 %v2062_v25, %s1835_s14 }
 0x399   : > { %v761_v36 = vpop.permute.xlu0 %760 }
 0x39a   : > { %773 = vmatpush.bf16.msra.mxu2 %v761_v36 }
 0x39b   : > { %870 = vrot.lane.b32.xlu2 %v2062_v25, %s1836_s27  ;;  %s1593_s27 = sshll.u32 %s1949_s25, 3  ;;  %s2324_s25 = sshll.u32 %s2014_s26, 3 }
 0x39c   : > { %925 = vrot.lane.b32.xlu1 %v2062_v25, %s1837_s18  ;;  %s1365_s20 = scalar_lea.hbm %s2321_s17, %s1593_s27  ;;  %s554_s23 = scalar_lea.vmem [#allocation6], %s2324_s25 }
 0x39d   : > { %s1369_s1 = sshll.u32 %s1365_s20, 4  ;;  %s1355_s18 = scalar_lea.sflag [#allocation5], %s2014_s26  ;;  %s1370_s1 = int_to_ptr.hbm [resolvable:$true] %s1369_s1 }
 0x3c4   : > { %920 = vadd.xlane.f32.xlu2 %v919_v41 }
 0x3e6   : > { %v756_v43 = vpop.xlane.xlu1 %755 }
 0x3e7   : > { %1711 = vrcp.f32 %v756_v43 }
 0x3e8   : > { %1713 = vrcp.f32 %v811_v42 }
 0x3ed   : > { %v1712_v44 = vpop.eup %1711 }
 0x3ee   : > { %v758_v45 = vmul.f32 %v1712_v44, %v1704_v23  ;;  %v1714_v25 = vpop.eup %1713 }
 0x3ef   : > { %v813_v48 = vmul.f32 %v1714_v25, %v1702_v13  ;;  %v1606_v13 = vld [vmem:[%s2282_s6 + $0x10] sm:$0xff] }
 0x3f0   : > { %v759_v46 = vpack.c.bf16 %v758_v45, %v758_v45  ;;  %1066 = vmatpush.bf16.msrb.mxu0 %v1606_v13  ;;  %v1535_v45 = vld [vmem:[%s2286_s10 + $0x20] sm:$0xf]  ;;  %v1615_v13 = vld [vmem:[%s2288_s12 + $0x10] sm:$0xff] }
 0x3f1   : > { %v814_v53 = vpack.c.bf16 %v813_v48, %v813_v48  ;;  %v1537_v48 = vld [vmem:[%s2286_s10 + $0x28] sm:$0xf0] }
 0x3f2   : > { %1495 = vmatmul.msk.bf16.vlgmr.msra.gmra.mxu2 %vm689_vm2, %v759_v46  ;;  %v1612_v46 = vld [vmem:[%s2286_s10 + $0x24] sm:$0xf0] }
 0x3f3   : > { %v1536_v25 = vor.u32 %v1612_v46, %v1535_v45 }
 0x3f4   : > { %1067 = vmatpush.bf16.msrb.mxu0 %v1605_v14 }
 0x3f6   : > { %v866_v47 = vpop.xlane.xlu2 %865 }
 0x3f7   : > { %1715 = vrcp.f32 %v866_v47  ;;  %v1611_v47 = vld [vmem:[%s2286_s10 + $0x24] sm:$0xf] }
 0x3f8   : > { %1068 = vmatpush.bf16.msrb.mxu0 %v1604_v15 }
 0x3fd   : > { %v1716_v49 = vpop.eup %1715 }
 0x3fe   : > { %v868_v50 = vmul.f32 %v1716_v49, %v1706_v29  ;;  %v871_v51 = vpop.permute.xlu2 %870  ;;  %v816_v52 = vpop.permute.xlu1 %815  ;;  %v1540_v49 = vor.u32 %v1611_v47, %v1537_v48 }
 0x3ff   : > { %828 = vmatpush.bf16.msra.mxu1 %v816_v52  ;;  %883 = vmatpush.bf16.msrb.mxu2 %v871_v51  ;;  %v1610_v51 = vld [vmem:[%s2286_s10 + $0x14] sm:$0xf0]  ;;  %v1609_v52 = vld [vmem:[%s2286_s10 + $0x14] sm:$0xf] }
 0x400   : > { %v869_v54 = vpack.c.bf16 %v868_v50, %v868_v50  ;;  %1178 = vmatpush.bf16.msra.mxu3 %v1540_v49  ;;  %v1527_v50 = vld [vmem:[%s2286_s10 + $0x10] sm:$0xf] }
 0x402   : > { %1497 = vmatmul.msk.bf16.vlgmr.msra.gmra.mxu1 %vm689_vm2, %v814_v53  ;;  %1499 = vmatmul.msk.bf16.vlgmr.msrb.gmra.mxu2 %vm689_vm2, %v869_v54  ;;  %v1528_v53 = vor.u32 %v1610_v51, %v1527_v50  ;;  %v1529_v54 = vld [vmem:[%s2286_s10 + $0x18] sm:$0xf0] }
 0x406   : > { %v981_v55 = vpop.permute.xlu1 %980  ;;  %v976_v56 = vpop.xlane.xlu0 %975 }
 0x407   : > { %1717 = vrcp.f32 %v976_v56  ;;  %993 = vmatpush.bf16.msra.mxu2 %v981_v55  ;;  %v1532_v55 = vor.u32 %v1609_v52, %v1529_v54  ;;  %v1519_v56 = vld [vmem:[%s2286_s10] sm:$0xf] }
 0x409   : > { %1179 = vmatpush.bf16.msra.mxu3 %v1532_v55 }
 0x40d   : > { %v1718_v57 = vpop.eup %1717 }
 0x40e   : > { %v978_v58 = vmul.f32 %v1718_v57, %v1708_v34  ;;  %v926_v59 = vpop.permute.xlu1 %925  ;;  %v1842_v34 = vmov 48.0   ;;  %v1608_v57 = vld [vmem:[%s2286_s10 + $0x4] sm:$0xf0] }
 0x40f   : > { %938 = vmatpush.bf16.msrb.mxu1 %v926_v59  ;;  %v1520_v59 = vor.u32 %v1608_v57, %v1519_v56 }
 0x410   : > { %v979_v60 = vpack.c.bf16 %v978_v58, %v978_v58  ;;  %v1607_v58 = vld [vmem:[%s2286_s10 + $0x4] sm:$0xf] }
 0x412   : > { %1503 = vmatmul.msk.bf16.vlgmr.msra.gmra.mxu2 %vm689_vm2, %v979_v60  ;;  %v1521_v60 = vld [vmem:[%s2286_s10 + $0x8] sm:$0xf0] }
 0x413   : > { %1165 = vmatpush.bf16.msra.mxu1 %v1536_v25 }
 0x417   : > { %1166 = vmatpush.bf16.msra.mxu1 %v1528_v53 }
 0x41b   : > { %1167 = vmatpush.bf16.msra.mxu1 %v1520_v59 }
 0x437   : > { %v921_v61 = vpop.xlane.xlu2 %920 }
 0x438   : > { %1719 = vrcp.f32 %v921_v61  ;;  %v1524_v61 = vor.u32 %v1607_v58, %v1521_v60 }
 0x439   : > { %1721 = vrcp.f32 %v1842_v34 }
 0x43a   : > { %1180 = vmatpush.bf16.msra.mxu3 %v1524_v61 }
 0x43e   : > { %v1720_v62 = vpop.eup %1719 }
 0x43f   : > { %v923_v63 = vmul.f32 %v1720_v62, %v1710_v40  ;;  %v1722_v35 = vpop.eup %1721  ;;  %v1620_v62 = vld [vmem:[%s2288_s12 + $0x38] sm:$0xff] }
 0x440   : > { %v1079_v36 = vmul.f32 48.0, %v1722_v35  ;;  %vm1083_vm6 = vweird.f32 %v1722_v35  ;;  %1294 = vmatpush.bf16.msrb.mxu2 %v1620_v62 }
 0x441   : > { %v924_v1 = vpack.c.bf16 %v923_v63, %v923_v63 }
 0x442   : > { %v1080_v37 = vsub.f32 1.0, %v1079_v36 }
 0x443   : > { %1501 = vmatmul.msk.bf16.vlgmr.msrb.gmra.mxu1 %vm689_vm2, %v924_v1 }
 0x444   : > { %v1081_v38 = vmul.f32 %v1722_v35, %v1080_v37 }
 0x446   : > { %v1082_v39 = vadd.f32 %v1722_v35, %v1081_v38 }
 0x448   : > { %v2139_v40 = vsel %vm1083_vm6, %v1722_v35, %v1082_v39 }
 0x475   : > { %v775_v2 = vpop.f32.mrf.mxu2 }
 0x47d   : > { %v777_v3 = vpop.f32.mrf.mxu2 }
 0x47e   : > { %v1624_v3 = vld [vmem:[%s2288_s12 + $0x58] sm:$0xff] }
 0x47f   : > { %v830_v4 = vpop.f32.mrf.mxu1  ;;  %1311 = vmatpush.bf16.msra.mxu0 %v1624_v3 }
 0x480   : > { %1004 = vrot.lane.b32.xlu1 %v830_v4, %s1838_s30  ;;  %s1771_s30 = sshra.s32 %s1370_s1, 4  ;;  %s1772_s30 = int_to_ptr.hbm [resolvable:$true] %s1771_s30 }
 0x481   : > { %s1773_s27 = scalar_lea.hbm %s1772_s30, 8  ;;  %p1778_p1 = scmp.lt.s32.totalorder %s1772_s30, %s2321_s17 }
 0x482   : > { %p1774_p6 = scmp.ne.s32.totalorder %s1772_s30, %s1773_s27 }
 0x484   : > { %p1775_p13 = pnand %p1774_p6, %p1978_p11 }
 0x485   : > { %v885_v5 = vpop.f32.mrf.mxu2 }
 0x486   : > { %1008 = vrot.lane.b32.xlu0 %v885_v5, %s1839_s0  ;;  %v1618_v5 = vld [vmem:[%s2288_s12 + $0x28] sm:$0xff]  ;;  %s2320_s0 = sld [smem:[#allocation17_spill]]  ;;  %p1776_p0 = pneg %p1775_p13 }
 0x487   : > { %v832_v7 = vpop.f32.mrf.mxu1 }
 0x488   : > { %1000 = vrot.lane.b32.xlu1 %v775_v2, %s1840_s28  ;;  %v1619_v2 = vld [vmem:[%s2288_s12 + $0x30] sm:$0xff]  ;;  %v1617_v7 = vld [vmem:[%s2288_s12 + $0x20] sm:$0xff] }
 0x489   : > { %1295 = vmatpush.bf16.msrb.mxu2 %v1619_v2  ;;  %v1696_v2 = vld [vmem:[%s2323_s16] ss:$0 sm:$0xff] }
 0x48d   : > { %v887_v8 = vpop.f32.mrf.mxu2  ;;  %1296 = vmatpush.bf16.msrb.mxu2 %v1618_v5 }
 0x491   : > { %1297 = vmatpush.bf16.msrb.mxu2 %v1617_v7 }
 0x495   : > { %v995_v9 = vpop.f32.mrf.mxu2 }
 0x496   : > { %1016 = vrot.lane.b32.xlu2 %v995_v9, %s1835_s14  ;;  %s1367_s14 = sshll.u32 %s554_s23, 4  ;;  %s1368_s14 = int_to_ptr.vmem [resolvable:$true] %s1367_s14 }
 0x49d   : > { %v997_v10 = vpop.f32.mrf.mxu2 }
 0x49e   : > { %v1616_v10 = vld [vmem:[%s2288_s12 + $0x18] sm:$0xff] }
 0x49f   : > { %1298 = vmatpush.bf16.msrb.mxu2 %v1616_v10 }
 0x4a3   : > { %1299 = vmatpush.bf16.msrb.mxu2 %v1615_v13 }
 0x4c0   : > { %v940_v11 = vpop.f32.mrf.mxu1 }
 0x4c1   : > { %1012 = vrot.lane.b32.xlu1 %v940_v11, %s1841_s21  ;;  %s1777_s21 = scalar_lea.hbm %s2321_s17, 16 }
 0x4c2   : > { %p1779_p3 = scmp.lt.s32.totalorder %s1777_s21, %s1773_s27 }
 0x4c4   : > { %p1780_p4 = por %p1779_p3, %p1778_p1 }
 0x4c6   : > { %p1781_p7 = pnand %p1780_p4, %p1776_p0 }
 0x4c8   : > { %v942_v12 = vpop.f32.mrf.mxu1 }
 0x4f0   : > { %v1017_v23 = vpop.permute.xlu2 %1016 }
 0x4f2   : > { %v1005_v16 = vpop.permute.xlu1 %1004 }
 0x4f8   : > { %v1009_v20 = vpop.permute.xlu0 %1008 }
 0x4fa   : > { %v1001_v17 = vpop.permute.xlu1 %1000 }
 0x4fb   : > { %v1019_v18 = vsel %vm668_vm1, %v2097_v0, %v1001_v17  ;;  %v1691_v0 = vld [vmem:[%s2283_s7] ss:$0 sm:$0xff] }
 0x4fc   : > { %v1020_v19 = vsel %vm689_vm2, %v1019_v18, %v1005_v16  ;;  %v1692_v16 = vld [vmem:[%s2284_s8] ss:$0 sm:$0xff] }
 0x4fd   : > { %v1022_v21 = vsel %vm1021_vm3, %v1020_v19, %v1009_v20  ;;  %v1693_v18 = vld [vmem:[%s2285_s9] ss:$0 sm:$0xff] }
 0x533   : > { %v1013_v22 = vpop.permute.xlu1 %1012 }
 0x534   : > { %v1024_v24 = vsel %vm1023_vm4, %v1022_v21, %v1013_v22 }
 0x535   : > { %v1026_v26 = vsel %vm1025_vm5, %v1024_v24, %v1017_v23  ;;  %v1614_v23 = vld [vmem:[%s2288_s12 + $0x8] sm:$0xff]  ;;  %v1623_v24 = vld [vmem:[%s2288_s12 + $0x50] sm:$0xff] }
 0x536   : > { %1027 = vst.msk [vmem:[#allocation2] sm:$0xff] %vm593_vm0, %v1026_v26  ;;  %1300 = vmatpush.bf16.msrb.mxu2 %v1614_v23  ;;  %1312 = vmatpush.bf16.msra.mxu0 %v1623_v24  ;;  %v1613_v26 = vld [vmem:[%s2288_s12] sm:$0xff] }
 0x53a   : > { %1301 = vmatpush.bf16.msrb.mxu2 %v1613_v26 }
 0x53d   : > { %v1028_v27 = vld [vmem:[#allocation2] sm:$0xff] }
 0x53e   : > { %v1029_v28 = vpack.c.bf16 %v1028_v27, %v1028_v27  ;;  %v1622_v27 = vld [vmem:[%s2288_s12 + $0x48] sm:$0xff] }
 0x53f   : > { %1313 = vmatpush.bf16.msra.mxu0 %v1622_v27 }
 0x540   : > { %1516 = vmatmul.msk.bf16.vlgmr.msrb.gmra.mxu0 %vm593_vm0, %v1029_v28  ;;  %v1621_v28 = vld [vmem:[%s2288_s12 + $0x40] sm:$0xff] }
 0x543   : > { %1314 = vmatpush.bf16.msra.mxu0 %v1621_v28 }
 0x5bd   : > { %v1070_v29 = vpop.f32.mrf.mxu0 }
 0x5be   : > { %v1071_v30 = vadd.f32 %v1691_v0, %v1070_v29  ;;  %v1115_v0 = vld [vmem:[%s2287_s11] sm:$0x3] }
 0x5bf   : > { %v1123_v29 = vperm.slane %v1115_v0, 0 }
 0x5c0   : > { %v1074_v31 = vadd.f32 %v1071_v30, %v2047_v6 }
 0x5c2   : > { %v1075_v32 = vsel %vm593_vm0, %v1074_v31, 0.0 }
 0x5c3   : > { %1076 = vadd.xlane.f32.xlu1 %v1075_v32 }
 0x5c5   : > { %v1072_v33 = vpop.f32.mrf.mxu0 }
 0x5c6   : > { %v1124_v33 = vperm.slane %v1115_v0, 1 }
 0x636   : > { %v1077_v41 = vpop.xlane.xlu1 %1076 }
 0x637   : > { %v1085_v42 = vmul.f32 %v2139_v40, %v1077_v41 }
 0x639   : > { %v1086_v43 = vsub.f32 %v1074_v31, %v1085_v42  ;;  %v1694_v42 = vld [vmem:[%s2289_s13] ss:$0 sm:$0xff] }
 0x63b   : > { %v1087_v44 = vmul.f32 %v1086_v43, %v1086_v43 }
 0x63d   : > { %v1088_v6 = vsel %vm593_vm0, %v1087_v44, 0.0 }
 0x63e   : > { %1089 = vadd.xlane.f32.xlu0 %v1088_v6 }
 0x6b1   : > { %v1090_v63 = vpop.xlane.xlu0 %1089 }
 0x6b2   : > { %v1091_v1 = vmul.f32 %v1090_v63, %v2139_v40  ;;  %v1695_v63 = vld [vmem:[%s2320_s0] ss:$0 sm:$0xff] }
 0x6b4   : > { %v1092_v4 = vadd.f32 1e-05, %v1091_v1 }
 0x6b6   : > { %1723 = vrsqrt.f32 %v1092_v4  ;;  %vm1099_vm8 = vweird.f32 %v1092_v4 }
 0x6bc   : > { %v1724_v8 = vpop.eup %1723 }
 0x6bd   : > { %v1094_v9 = vmul.f32 %v1724_v8, %v1092_v4  ;;  %vm1100_vm7 = vweird.f32 %v1724_v8 }
 0x6be   : > { %vm1101_vm9 = vmor %vm1099_vm8, %vm1100_vm7 }
 0x6bf   : > { %v1095_v11 = vmul.f32 %v1724_v8, %v1094_v9 }
 0x6c1   : > { %v1096_v12 = vmul.f32 0.5, %v1095_v11 }
 0x6c3   : > { %v1097_v14 = vsub.f32 1.5, %v1096_v12 }
 0x6c5   : > { %v1098_v15 = vmul.f32 %v1724_v8, %v1097_v14 }
 0x6c7   : > { %v1102_v17 = vsel %vm1101_vm9, %v1724_v8, %v1098_v15 }
 0x6c8   : > { %v1103_v19 = vmul.f32 %v1102_v17, %v1086_v43 }
 0x6ca   : > { %v1108_v20 = vmul.f32 %v1692_v16, %v1103_v19 }
 0x6cc   : > { %v1113_v21 = vadd.f32 %v1693_v18, %v1108_v20 }
 0x6ce   : > { %v1114_v22 = vpack.c.bf16 %v1113_v21, %v1113_v21 }
 0x6d0   : > { %1541 = vmatmul.msk.bf16.vlgmr.msra.gmra.mxu1 %vm593_vm0, %v1114_v22  ;;  %1542 = vmatmul.msk.bf16.vlgmr.msra.gmra.mxu3 %vm593_vm0, %v1114_v22 }
 0x74d   : > { %v1169_v30 = vpop.f32.mrf.mxu1 }
 0x74e   : > { %v1170_v31 = vadd.f32 %v1169_v30, %v1123_v29 }
 0x750   : > { %v1186_v32 = vmax.f32 %v1170_v31, 0.0 }
 0x752   : > { %v1188_v34 = vpack.c.bf16 %v1186_v32, %v1186_v32 }
 0x753   : > { %v1182_v35 = vpop.f32.mrf.mxu3 }
 0x754   : > { %v1183_v36 = vadd.f32 %v1182_v35, %v1124_v33  ;;  %1302 = vmatmul.bf16.vlgmr.msrb.gmra.mxu2 %v1188_v34 }
 0x755   : > { %v1171_v37 = vpop.f32.mrf.mxu1 }
 0x756   : > { %v1187_v38 = vmax.f32 %v1183_v36, 0.0 }
 0x758   : > { %v1189_v39 = vpack.c.bf16 %v1187_v38, %v1187_v38 }
 0x75a   : > { %1591 = vmatmul.msk.bf16.vlgmr.msra.gmra.mxu0 %vm1290_vm10, %v1189_v39 }
 0x75b   : > { %v1184_v41 = vpop.f32.mrf.mxu3 }
 0x7d7   : > { %v1303_v43 = vpop.f32.mrf.mxu2  ;;  %v1316_v44 = vpop.f32.mrf.mxu0 }
 0x7d8   : > { %v1304_v6 = vadd.f32 %v1694_v42, %v1303_v43 }
 0x7da   : > { %v1317_v45 = vadd.f32 %v1316_v44, %v1304_v6 }
 0x7dc   : > { %v1320_v46 = vadd.f32 %v1317_v45, %v1113_v21 }
 0x7de   : > { %v1321_v47 = vsel %vm593_vm0, %v1320_v46, 0.0 }
 0x7df   : > { %v1305_v25 = vpop.f32.mrf.mxu2  ;;  %v1318_v48 = vpop.f32.mrf.mxu0  ;;  %1322 = vadd.xlane.f32.xlu2 %v1321_v47 }
 0x852   : > { %v1323_v49 = vpop.xlane.xlu2 %1322 }
 0x853   : > { %v1324_v50 = vmul.f32 %v1323_v49, %v2139_v40 }
 0x855   : > { %v1325_v51 = vsub.f32 %v1320_v46, %v1324_v50 }
 0x857   : > { %v1326_v52 = vmul.f32 %v1325_v51, %v1325_v51 }
 0x859   : > { %v1327_v53 = vsel %vm593_vm0, %v1326_v52, 0.0 }
 0x85a   : > { %1328 = vadd.xlane.f32.xlu1 %v1327_v53 }
 0x8cd   : > { %v1329_v54 = vpop.xlane.xlu1 %1328 }
 0x8ce   : > { %v1330_v55 = vmul.f32 %v1329_v54, %v2139_v40 }
 0x8d0   : > { %v1331_v56 = vadd.f32 1e-05, %v1330_v55 }
 0x8d2   : > { %1725 = vrsqrt.f32 %v1331_v56  ;;  %vm1338_vm12 = vweird.f32 %v1331_v56 }
 0x8d8   : > { %v1726_v57 = vpop.eup %1725 }
 0x8d9   : > { %v1333_v58 = vmul.f32 %v1726_v57, %v1331_v56  ;;  %vm1339_vm11 = vweird.f32 %v1726_v57 }
 0x8da   : > { %vm1340_vm13 = vmor %vm1338_vm12, %vm1339_vm11 }
 0x8db   : > { %v1334_v59 = vmul.f32 %v1726_v57, %v1333_v58 }
 0x8dd   : > { %v1335_v60 = vmul.f32 0.5, %v1334_v59 }
 0x8df   : > { %v1336_v61 = vsub.f32 1.5, %v1335_v60 }
 0x8e1   : > { %v1337_v62 = vmul.f32 %v1726_v57, %v1336_v61 }
 0x8e3   : > { %v1341_v40 = vsel %vm1340_vm13, %v1726_v57, %v1337_v62 }
 0x8e4   : > { %v1342_v1 = vmul.f32 %v1341_v40, %v1325_v51 }
 0x8e6   : > { %v1347_v3 = vmul.f32 %v1695_v63, %v1342_v1 }
 0x8e8   : > { %v1352_v4 = vadd.f32 %v1696_v2, %v1347_v3 }
 0x8ea   : > { %1353 = vst.msk [vmem:[%s554_s23] sm:$0xff] %vm593_vm0, %v1352_v4 }
 0x8eb   : > { %1784 = shalt.err (!%p1781_p7)
}
 0x8ec   : > { %1627 = dma.vmem_to_hbm [thread:$0]  (%p1978_p11), %s1368_s14, 128, %s1370_s1, %s1355_s18  }
 0x8ed PF: > { %s2325_s26 = sld [smem:[#allocation9_spill]]  ;;  %p2327_p5 = scmp.ge.s32.totalorder %s1823_s24, 2 }
 0x8ef   : > { %p1634_p8 = pnand %p2327_p5, %p1982_p12 }
 0x8f1   : > { %p1635_p10 = pneg %p1634_p8 }
 0x8f3   : > { %s1381_s16 = sand.u32 1, %s2325_s26  }
 0x8f4   : > { %s1382_s25 = scalar_lea.sflag [#allocation5], %s1381_s16 }
 0x8f5   : > { %1806 = dma.done.wait (%p1635_p10), %s1382_s25, 128  }
 0x8f6   : > { %1808 = vsyncadd (%p1635_p10), %s1382_s25, 4294967168  ;;  %s2328_s24 = sld [smem:[#allocation11_spill]]  ;;  %s2331_s21 = smov %s1815_s22 }
 0x8f7   : > { %s2329_s23 = sld [smem:[#allocation10_spill]] }
 0x8f8   : > { %s2330_s30 = sld [smem:[#allocation12_spill]] }
 0x8fc   : > { %p29_p2 = scmp.ge.s32.totalorder %s2328_s24, 4  }
 0x8fd   : > { %s2332_s22 = smov %s2329_s23 }
 0x8fe   : > { %s2333_s23 = smov %s2330_s30  ;;  %31 = sbr.rel (!%p29_p2) target bundleno = 11 (0xb), region = 132 }
 0x903   :  { %1388 = vsyncpa [#allocation4], 1 }
 0x904   :  { %1390 = vsyncpa [#allocation4 + $0x1], 1 }
 0x905   :  { %1391 = vsyncpa [#allocation5], 1 }
 0x906   :  { %1393 = vsyncpa [#allocation5 + $0x1], 1 }

</bundles_post_ra>
